<compile_context>
chip_gen: v7x
topology: tpu7x:2x2x1
jax: 0.10.0
libtpu: 0.0.40
codegen_flags: <defaults>
</compile_context>

<pallas_src>
import functools

import jax
import jax.numpy as jnp
from jax import lax
from jax.experimental import pallas as pl
from jax.experimental.pallas import tpu as pltpu

HIDDEN = 1024
INTER = 256
LANE = 128

# Older jax releases exposed the Mosaic params object as TPUCompilerParams.
_CompilerParams = getattr(pltpu, "CompilerParams", None) or getattr(
    pltpu, "TPUCompilerParams")


# ---------------------------------------------------------------------------
# Kernels
# ---------------------------------------------------------------------------
def _accum_block_sum(x_ref, add_fn, *, sub, n_sub):
    """Adds the f32 sequence-sum of an [b, s, H] block via `add_fn`.

    The reduction runs in `sub`-row chunks inside a fori_loop so no full-block
    f32 temporary is materialized in VMEM (matters for large bf16 blocks)."""
    if n_sub == 1:
        add_fn(jnp.sum(x_ref[...], axis=1, dtype=jnp.float32))
    else:
        def body(j, carry):
            off = pl.multiple_of(j * sub, sub)
            add_fn(jnp.sum(x_ref[:, pl.ds(off, sub), :], axis=1,
                           dtype=jnp.float32))
            return carry

        lax.fori_loop(0, n_sub, body, 0, unroll=False)


def _cicc_head_kernel(x_ref, w1_ref, b1_ref, w2_ref, b2_ref, out_ref, acc_ref,
                      *, inv_s, sub, n_sub):
    """Fused mean-pool (over S) + Linear(1024,256) + Tanh + Linear(256,Cpad)."""
    s_step = pl.program_id(1)

    @pl.when(s_step == 0)
    def _init():
        acc_ref[...] = jnp.zeros_like(acc_ref)

    def _add(v):
        acc_ref[...] += v

    _accum_block_sum(x_ref, _add, sub=sub, n_sub=n_sub)

    @pl.when(s_step == pl.num_programs(1) - 1)
    def _finalize():
        pooled = acc_ref[...] * inv_s                               # [bt, H]
        # Linear(1024 -> 256) + (dropout: identity at eval) + Tanh
        h = jnp.dot(pooled, w1_ref[...], preferred_element_type=jnp.float32)
        h = jnp.tanh(h + b1_ref[...])                               # [bt, 256]
        # Linear(256 -> C_pad)
        logits = jnp.dot(h, w2_ref[...], preferred_element_type=jnp.float32)
        out_ref[...] = (logits + b2_ref[...]).astype(out_ref.dtype)


def _pool_partial_kernel(x_ref, out_ref, *, sub, n_sub):
    """Partial sequence-sums for the 2-way split (two TensorCores) path."""
    @pl.when(pl.program_id(1) == 0)
    def _init():
        out_ref[...] = jnp.zeros_like(out_ref)

    def _add(v):
        out_ref[...] += v[None]

    _accum_block_sum(x_ref, _add, sub=sub, n_sub=n_sub)


# ---------------------------------------------------------------------------
# Planning helpers
# ---------------------------------------------------------------------------
def _round_up(n, m):
    return ((n + m - 1) // m) * m


def _largest_divisor(n, limit, align=1):
    limit = max(1, min(int(limit), n))
    for t in range(limit, 0, -1):
        if n % t == 0 and t % align == 0:
            return t
    return n


def _sublane_align(dtype):
    # Native (sublane, lane) packing: f32 (8,128), bf16 (16,128), int8/fp8 (32,128)
    return {1: 32, 2: 16}.get(jnp.dtype(dtype).itemsize, 8)


def _tpu_config():
    """Generation-aware block / VMEM budget (v5e/v6e: 128 MiB VMEM, 1 TC;
    v7x: 64 MiB VMEM, 2 TCs, 3.2 TB/s HBM)."""
    kind = ""
    try:
        kind = jax.devices()[0].device_kind.lower()
    except Exception:
        pass
    if "v2" in kind or "v3" in kind:
        return {"kind": kind, "block_target": 2 << 20, "vmem_cap": 12 << 20,
                "multi_core": False}
    if "v5" in kind or "v6" in kind:
        return {"kind": kind, "block_target": 20 << 20, "vmem_cap": 100 << 20,
                "multi_core": False}
    if "v4" in kind:
        return {"kind": kind, "block_target": 20 << 20, "vmem_cap": 96 << 20,
                "multi_core": True}
    if "v7" in kind or "tpu7" in kind:
        return {"kind": kind, "block_target": 14 << 20, "vmem_cap": 52 << 20,
                "multi_core": True}
    # Unknown TPU: conservative caps that fit v7x's 64 MiB VMEM.
    return {"kind": kind, "block_target": 12 << 20, "vmem_cap": 48 << 20,
            "multi_core": True}


def _pick_b_tile(B):
    # Prefer >= 2 blocks on the "parallel" B axis (second TensorCore on v7x)
    # and a reasonably tall tile for the finalize matmul (v5e MXU occupancy).
    if B >= 16 and B % 8 == 0:
        for cand in (32, 16, 8):
            if B % cand == 0 and B // cand >= 2:
                return cand
    return B       # single full-B block (the split path restores parallelism)


def _pick_sub(b_tile, s_tile, dtype):
    align = _sublane_align(dtype)
    # Keep each chunk's f32 reduction temporary around <= 2 MiB.
    sub_max = max(align, min(256, (2 << 20) // max(1, b_tile * HIDDEN * 4)))
    if s_tile <= sub_max:
        return s_tile, 1
    sub = _largest_divisor(s_tile, sub_max, align=align)
    return sub, s_tile // sub


def _vmem_need(b_tile, s_tile, dtype, c_pad):
    itemsize = jnp.dtype(dtype).itemsize
    sub, _ = _pick_sub(b_tile, s_tile, dtype)
    act = b_tile * s_tile * HIDDEN * itemsize            # streamed input block
    wts = (HIDDEN * INTER + INTER + INTER * c_pad + c_pad) * 4
    outb = b_tile * max(c_pad, HIDDEN) * 4                # covers both kernels
    acc = b_tile * HIDDEN * 4
    tmp = b_tile * sub * HIDDEN * 4                       # chunk f32 temporary
    # 2x input (double-buffered), 2x weights (default double-buffer), headroom.
    return 2 * act + 2 * wts + 2 * outb + acc + 2 * tmp + (4 << 20)


def _plan_tiles(B, S, dtype, c_pad, cfg, block_target):
    itemsize = jnp.dtype(dtype).itemsize
    align = _sublane_align(dtype)
    b_tile = _pick_b_tile(B)
    row_bytes = b_tile * HIDDEN * itemsize
    if S * row_bytes <= block_target:
        s_tile = S                                        # whole sequence fits
    else:
        s_tile = max(align, (block_target // row_bytes) // align * align)
        n_s = int(pl.cdiv(S, s_tile))
        s_tile = min(s_tile, _round_up(int(pl.cdiv(S, n_s)), align))
    # Shrink until the double-buffered working set fits the per-core VMEM cap.
    while _vmem_need(b_tile, s_tile, dtype, c_pad) > cfg["vmem_cap"]:
        new_s = max(align, (s_tile // 2) // align * align)
        if new_s >= s_tile:
            break
        s_tile = new_s
    return b_tile, s_tile


def _cost_estimate(B, S, itemsize, c_pad):
    if not hasattr(pl, "CostEstimate"):
        return None
    return pl.CostEstimate(
        flops=int(B * S * HIDDEN + 2 * B * HIDDEN * INTER
                  + 2 * B * INTER * c_pad),
        transcendentals=int(B * INTER),
        bytes_accessed=int(B * S * HIDDEN * itemsize
                           + (HIDDEN * INTER + INTER * c_pad) * 4
                           + B * c_pad * 4),
    )


# ---------------------------------------------------------------------------
# pallas_call wrappers
# ---------------------------------------------------------------------------
def _fused_head_call(x, w1, b1, w2, b2, *, inv_s, cfg, block_target):
    """Mean-pool + MLP head, fused in one pallas_call.  x: [B, S, H]."""
    B, S, H = x.shape
    assert H == HIDDEN
    c_pad = w2.shape[1]

    b_tile, s_tile = _plan_tiles(B, S, x.dtype, c_pad, cfg, block_target)
    S_pad = _round_up(S, s_tile)
    if S_pad != S:
        # Zero rows do not change the sequence sum; inv_s stays 1/S_original.
        x = jnp.pad(x, ((0, 0), (0, S_pad - S), (0, 0)))
    n_b, n_s = B // b_tile, S_pad // s_tile
    sub, n_sub = _pick_sub(b_tile, s_tile, x.dtype)
    itemsize = jnp.dtype(x.dtype).itemsize
    vmem_limit = int(max(cfg["vmem_cap"],
                         _vmem_need(b_tile, s_tile, x.dtype, c_pad)))

    kernel = functools.partial(_cicc_head_kernel, inv_s=inv_s,
                               sub=sub, n_sub=n_sub)
    return pl.pallas_call(
        kernel,
        out_shape=jax.ShapeDtypeStruct((B, c_pad), jnp.float32),
        grid=(n_b, n_s),
        in_specs=[
            # Streaming activations, tiled over (B, S); H stays whole.
            pl.BlockSpec((b_tile, s_tile, HIDDEN), lambda bi, si: (bi, si, 0)),
            # Weights: constant block index -> VMEM-resident across the S loop.
            pl.BlockSpec((HIDDEN, INTER), lambda bi, si: (0, 0)),
            pl.BlockSpec((1, INTER), lambda bi, si: (0, 0)),
            pl.BlockSpec((INTER, c_pad), lambda bi, si: (0, 0)),
            pl.BlockSpec((1, c_pad), lambda bi, si: (0, 0)),
        ],
        out_specs=pl.BlockSpec((b_tile, c_pad), lambda bi, si: (bi, 0)),
        scratch_shapes=[pltpu.VMEM((b_tile, HIDDEN), jnp.float32)],
        compiler_params=_CompilerParams(
            dimension_semantics=("parallel", "arbitrary"),
            vmem_limit_bytes=vmem_limit),
        cost_estimate=_cost_estimate(B, S_pad, itemsize, c_pad),
    )(x, w1, b1, w2, b2)


def _pool_partial_call(x, *, b_tile, s_tile, n_split, n_s_per, c_pad, cfg):
    """Stage 1 of the split path: per-split partial sequence sums, [ns, B, H]."""
    B, S_pad, H = x.shape
    sub, n_sub = _pick_sub(b_tile, s_tile, x.dtype)
    vmem_limit = int(max(cfg["vmem_cap"],
                         _vmem_need(b_tile, s_tile, x.dtype, c_pad)))
    kernel = functools.partial(_pool_partial_kernel, sub=sub, n_sub=n_sub)
    return pl.pallas_call(
        kernel,
        out_shape=jax.ShapeDtypeStruct((n_split, B, H), jnp.float32),
        grid=(n_split, n_s_per),
        in_specs=[pl.BlockSpec(
            (b_tile, s_tile, H),
            lambda sp, si: (0, sp * n_s_per + si, 0))],
        out_specs=pl.BlockSpec((1, b_tile, H), lambda sp, si: (sp, 0, 0)),
        compiler_params=_CompilerParams(
            dimension_semantics=("parallel", "arbitrary"),
            vmem_limit_bytes=vmem_limit),
    )(x)


def cicc_ernie_head(last_hidden_state, params, *, stream_dtype=jnp.bfloat16,
                    block_target_bytes=None, force_split=None):
    """Pallas forward of the CICC_ERNIE classification head.

    last_hidden_state: [B, S, 1024] (f32 or bf16)
    params: w1 [1024,256], b1 [1,256], w2 [256,C], b2 [1,C]
    returns logits [B, C] f32
    """
    B, S, H = last_hidden_state.shape
    assert H == HIDDEN
    cfg = _tpu_config()
    block_target = int(block_target_bytes or cfg["block_target"])

    w1 = params["w1"].astype(jnp.float32)
    b1 = params["b1"].astype(jnp.float32).reshape(1, INTER)
    w2 = params["w2"].astype(jnp.float32)
    b2 = params["b2"].astype(jnp.float32).reshape(1, -1)
    C = w2.shape[1]

    # Lane-dense output slab: pad num_classes up to a multiple of 128.
    c_pad = max(LANE, _round_up(C, LANE))
    if c_pad != C:
        w2 = jnp.pad(w2, ((0, 0), (0, c_pad - C)))
        b2 = jnp.pad(b2, ((0, 0), (0, c_pad - C)))

    x = last_hidden_state
    if stream_dtype is not None and x.dtype != jnp.dtype(stream_dtype):
        # Halves streamed HBM bytes (bf16); under jit this cast fuses into the
        # upstream encoder's output.  Accumulation stays f32 in the kernel.
        # TODO(synk): fp8 stream on v7x if the encoder can emit it.
        x = x.astype(stream_dtype)

    b_tile, s_tile = _plan_tiles(B, S, x.dtype, c_pad, cfg, block_target)
    n_b = B // b_tile
    n_s = int(pl.cdiv(S, s_tile))
    want_split = cfg["multi_core"] if force_split is None else bool(force_split)
    inv_s = 1.0 / S

    if want_split and n_b == 1 and n_s >= 2:
        # A single block on the "parallel" B axis would leave the second
        # TensorCore idle (v7x): split the S reduction into two parallel
        # halves, then finish the tiny head from the two partial sums.
        n_split = 2
        n_s_per = int(pl.cdiv(n_s, n_split))
        S_pad = n_split * n_s_per * s_tile
        if S_pad != S:
            x = jnp.pad(x, ((0, 0), (0, S_pad - S), (0, 0)))
        partial = _pool_partial_call(x, b_tile=b_tile, s_tile=s_tile,
                                     n_split=n_split, n_s_per=n_s_per,
                                     c_pad=c_pad, cfg=cfg)          # [2, B, H]
        xh = jnp.transpose(partial, (1, 0, 2))                      # [B, 2, H]
        logits_pad = _fused_head_call(xh, w1, b1, w2, b2, inv_s=inv_s,
                                      cfg=cfg, block_target=block_target)
    else:
        logits_pad = _fused_head_call(x, w1, b1, w2, b2, inv_s=inv_s,
                                      cfg=cfg, block_target=block_target)

    return logits_pad[:, :C]


def cicc_ernie_forward(mode, last_hidden_state, labels, params):
    """Mirrors CICC_ERNIE.forward mode handling (without criterion)."""
    # TODO(synk): the pretrained ERNIE encoder (getBert) is external and not
    # translated; this consumes its `last_hidden_state`.
    logits = cicc_ernie_head(last_hidden_state, params)
    if mode == "eval":
        return labels, jnp.argmax(logits, axis=-1)
    return labels, logits   # 'predict' ('train' would feed logits to a criterion)


# ---------------------------------------------------------------------------
# Reference / test harness
# ---------------------------------------------------------------------------
def init_params(key, num_classes):
    k1, k2, k3, k4 = jax.random.split(key, 4)
    w1 = jax.random.normal(k1, (HIDDEN, INTER), jnp.float32) * 0.02
    b1 = jax.random.normal(k2, (1, INTER), jnp.float32) * 0.01
    w2 = jax.random.normal(k3, (INTER, num_classes), jnp.float32) * 0.02
    b2 = jax.random.normal(k4, (1, num_classes), jnp.float32) * 0.01
    return {"w1": w1, "b1": b1, "w2": w2, "b2": b2}


def _reference(x, params):
    pooled = jnp.mean(x.astype(jnp.float32), axis=1)
    h = jnp.tanh(pooled @ params["w1"] + params["b1"])
    return h @ params["w2"] + params["b2"]


if __name__ == "__main__":
    key = jax.random.PRNGKey(0)
    k_x, k_p, k_l, k_x2, k_x3 = jax.random.split(key, 5)

    num_classes = 4
    params = init_params(k_p, num_classes)

    # 1) Small shapes matching the module's forward (B=2, S=8, H=1024), exact
    #    f32 streaming path.
    B, S = 2, 8
    x_small = jax.random.normal(k_x, (B, S, HIDDEN), jnp.float32)
    labels = jax.random.randint(k_l, (B,), 0, num_classes)

    logits = jax.block_until_ready(
        cicc_ernie_head(x_small, params, stream_dtype=None))
    ref = _reference(x_small, params)
    assert logits.shape == (B, num_classes)
    assert jnp.allclose(logits, ref, atol=1e-3, rtol=1e-3), "f32 small mismatch"

    # forward() mode handling ('eval' returns labels + argmax, like the module)
    _, preds = cicc_ernie_forward("eval", x_small, labels, params)
    assert preds.shape == (B,)

    # 2) Default bf16 streaming (f32 accumulation) on the same input.
    logits_bf = jax.block_until_ready(cicc_ernie_head(x_small, params))
    ref_bf = _reference(x_small.astype(jnp.bfloat16), params)
    assert jnp.allclose(logits_bf, ref_bf, atol=1e-2, rtol=1e-2), "bf16 mismatch"

    # 3) Multiple blocks on the parallel B axis + in-kernel chunked reduction.
    B3, S3 = 16, 256
    x3 = jax.random.normal(k_x2, (B3, S3, HIDDEN), jnp.float32)
    out3 = jax.block_until_ready(
        cicc_ernie_head(x3, params, block_target_bytes=4 << 20))
    ref3 = _reference(x3.astype(jnp.bfloat16), params)
    assert jnp.allclose(out3, ref3, atol=1e-2, rtol=1e-2), "tiled-B mismatch"

    # 4) Awkward S (zero-padded to the tile), multi-step S accumulation,
    #    split path disabled so the fused accumulator is exercised everywhere.
    B4, S4 = 4, 200
    x4 = jax.random.normal(k_x3, (B4, S4, HIDDEN), jnp.float32)
    out4 = jax.block_until_ready(
        cicc_ernie_head(x4, params, block_target_bytes=1 << 20,
                        force_split=False))
    ref4 = _reference(x4.astype(jnp.bfloat16), params)
    assert jnp.allclose(out4, ref4, atol=1e-2, rtol=1e-2), "padded-S mismatch"

    # 5) Two-TensorCore split path (forced so it is validated on any chip).
    out5 = jax.block_until_ready(
        cicc_ernie_head(x4, params, block_target_bytes=1 << 20,
                        force_split=True))
    assert jnp.allclose(out5, ref4, atol=1e-2, rtol=1e-2), "split-path mismatch"

    print("KERNEL_OK")
</pallas_src>

<mosaic_0001>
module attributes {stable_mosaic.version = 11 : i64} {
  func.func @_cicc_head_kernel(%arg0: i32, %arg1: i32, %arg2: memref<2x8x1024xf32, #tpu.memory_space<vmem>>, %arg3: memref<1024x256xf32, #tpu.memory_space<vmem>>, %arg4: memref<1x256xf32, #tpu.memory_space<vmem>>, %arg5: memref<256x128xf32, #tpu.memory_space<vmem>>, %arg6: memref<1x128xf32, #tpu.memory_space<vmem>>, %arg7: memref<2x128xf32, #tpu.memory_space<vmem>>, %arg8: memref<2x1024xf32, #tpu.memory_space<vmem>>) attributes {dimension_semantics = [#tpu.dimension_semantics<parallel>, #tpu.dimension_semantics<arbitrary>], iteration_bounds = array<i64: 1, 1>, scalar_prefetch = 0 : i64, scratch_operands = 1 : i64, tpu.core_type = #tpu.core_type<tc>, window_params = [{transform_indices = @transform_0, window_bounds = array<i64: 2, 8, 1024>}, {pipeline_mode = #tpu.pipeline_mode<synchronous>, transform_indices = @transform_1, window_bounds = array<i64: 1024, 256>}, {pipeline_mode = #tpu.pipeline_mode<synchronous>, transform_indices = @transform_2, window_bounds = array<i64: 1, 256>}, {pipeline_mode = #tpu.pipeline_mode<synchronous>, transform_indices = @transform_3, window_bounds = array<i64: 256, 128>}, {pipeline_mode = #tpu.pipeline_mode<synchronous>, transform_indices = @transform_4, window_bounds = array<i64: 1, 128>}, {transform_indices = @transform_5, window_bounds = array<i64: 2, 128>}]} {
    %c0_i32 = arith.constant 0 : i32
    %0 = arith.cmpi eq, %arg1, %c0_i32 : i32
    %1 = arith.extui %0 : i1 to i32
    %c0_i32_0 = arith.constant 0 : i32
    %2 = arith.cmpi ne, %1, %c0_i32_0 : i32
    scf.if %2 {
      %cst_9 = arith.constant 0.000000e+00 : f32
      %11 = vector.broadcast %cst_9 : f32 to vector<2x1024xf32>
      %c0_10 = arith.constant 0 : index
      %c0_11 = arith.constant 0 : index
      %12 = vector.load %arg8[%c0_10, %c0_11] : memref<2x1024xf32, #tpu.memory_space<vmem>>, vector<2x1024xf32>
      tpu.vector_store %arg8[%c0_10, %c0_11], %11 {strides = array<i32>} : memref<2x1024xf32, #tpu.memory_space<vmem>>, vector<2x1024xf32>,
    } else {
    }
    %c0 = arith.constant 0 : index
    %c0_1 = arith.constant 0 : index
    %c0_2 = arith.constant 0 : index
    %3 = vector.load %arg2[%c0, %c0_1, %c0_2] : memref<2x8x1024xf32, #tpu.memory_space<vmem>>, vector<2x8x1024xf32>
    %cst = arith.constant dense<0.000000e+00> : vector<2x1024xf32>
    %4 = vector.multi_reduction <add>, %3, %cst [1] : vector<2x8x1024xf32> to vector<2x1024xf32>
    %c0_3 = arith.constant 0 : index
    %c0_4 = arith.constant 0 : index
    %5 = vector.load %arg8[%c0_3, %c0_4] : memref<2x1024xf32, #tpu.memory_space<vmem>>, vector<2x1024xf32>
    %6 = arith.addf %5, %4 : vector<2x1024xf32>
    %c0_5 = arith.constant 0 : index
    %c0_6 = arith.constant 0 : index
    %7 = vector.load %arg8[%c0_5, %c0_6] : memref<2x1024xf32, #tpu.memory_space<vmem>>, vector<2x1024xf32>
    tpu.vector_store %arg8[%c0_5, %c0_6], %6 {strides = array<i32>} : memref<2x1024xf32, #tpu.memory_space<vmem>>, vector<2x1024xf32>,
    %c0_i32_7 = arith.constant 0 : i32
    %8 = arith.cmpi eq, %arg1, %c0_i32_7 : i32
    %9 = arith.extui %8 : i1 to i32
    %c0_i32_8 = arith.constant 0 : i32
    %10 = arith.cmpi ne, %9, %c0_i32_8 : i32
    scf.if %10 {
      %c0_9 = arith.constant 0 : index
      %c0_10 = arith.constant 0 : index
      %11 = vector.load %arg8[%c0_9, %c0_10] : memref<2x1024xf32, #tpu.memory_space<vmem>>, vector<2x1024xf32>
      %cst_11 = arith.constant 1.250000e-01 : f32
      %12 = vector.broadcast %cst_11 : f32 to vector<2x1024xf32>
      %13 = arith.mulf %11, %12 : vector<2x1024xf32>
      %c0_12 = arith.constant 0 : index
      %c0_13 = arith.constant 0 : index
      %14 = vector.load %arg3[%c0_12, %c0_13] : memref<1024x256xf32, #tpu.memory_space<vmem>>, vector<1024x256xf32>
      %cst_14 = arith.constant dense<0.000000e+00> : vector<2x256xf32>
      %15 = tpu.matmul %13, %14, %cst_14 {dimension_numbers = #tpu.dot_dimension_numbers<[1], [0], [0], [1], [0, 0, 1, 1], [], []>} : vector<2x1024xf32>, vector<1024x256xf32>, vector<2x256xf32> -> vector<2x256xf32>
      %c0_15 = arith.constant 0 : index
      %c0_16 = arith.constant 0 : index
      %16 = vector.load %arg4[%c0_15, %c0_16] : memref<1x256xf32, #tpu.memory_space<vmem>>, vector<1x256xf32>
      %17 = vector.broadcast %16 : vector<1x256xf32> to vector<2x256xf32>
      %18 = arith.addf %15, %17 : vector<2x256xf32>
      %19 = math.tanh %18 : vector<2x256xf32>
      %c0_17 = arith.constant 0 : index
      %c0_18 = arith.constant 0 : index
      %20 = vector.load %arg5[%c0_17, %c0_18] : memref<256x128xf32, #tpu.memory_space<vmem>>, vector<256x128xf32>
      %cst_19 = arith.constant dense<0.000000e+00> : vector<2x128xf32>
      %21 = tpu.matmul %19, %20, %cst_19 {dimension_numbers = #tpu.dot_dimension_numbers<[1], [0], [0], [1], [0, 0, 1, 1], [], []>} : vector<2x256xf32>, vector<256x128xf32>, vector<2x128xf32> -> vector<2x128xf32>
      %c0_20 = arith.constant 0 : index
      %c0_21 = arith.constant 0 : index
      %22 = vector.load %arg6[%c0_20, %c0_21] : memref<1x128xf32, #tpu.memory_space<vmem>>, vector<1x128xf32>
      %23 = vector.broadcast %22 : vector<1x128xf32> to vector<2x128xf32>
      %24 = arith.addf %21, %23 : vector<2x128xf32>
      %c0_22 = arith.constant 0 : index
      %c0_23 = arith.constant 0 : index
      %25 = vector.load %arg7[%c0_22, %c0_23] : memref<2x128xf32, #tpu.memory_space<vmem>>, vector<2x128xf32>
      tpu.vector_store %arg7[%c0_22, %c0_23], %24 {strides = array<i32>} : memref<2x128xf32, #tpu.memory_space<vmem>>, vector<2x128xf32>,
    } else {
    }
    return
  }
  func.func @transform_0(%arg0: i32, %arg1: i32) -> (i32, i32, i32) {
    %c0_i32 = arith.constant 0 : i32
    %c0_i32_0 = arith.constant 0 : i32
    return %arg0, %arg1, %c0_i32 : i32, i32, i32
  }
  func.func @transform_1(%arg0: i32, %arg1: i32) -> (i32, i32) {
    %c0_i32 = arith.constant 0 : i32
    %c0_i32_0 = arith.constant 0 : i32
    %c0_i32_1 = arith.constant 0 : i32
    return %c0_i32, %c0_i32_0 : i32, i32
  }
  func.func @transform_2(%arg0: i32, %arg1: i32) -> (i32, i32) {
    %c0_i32 = arith.constant 0 : i32
    %c0_i32_0 = arith.constant 0 : i32
    %c0_i32_1 = arith.constant 0 : i32
    return %c0_i32, %c0_i32_0 : i32, i32
  }
  func.func @transform_3(%arg0: i32, %arg1: i32) -> (i32, i32) {
    %c0_i32 = arith.constant 0 : i32
    %c0_i32_0 = arith.constant 0 : i32
    %c0_i32_1 = arith.constant 0 : i32
    return %c0_i32, %c0_i32_0 : i32, i32
  }
  func.func @transform_4(%arg0: i32, %arg1: i32) -> (i32, i32) {
    %c0_i32 = arith.constant 0 : i32
    %c0_i32_0 = arith.constant 0 : i32
    %c0_i32_1 = arith.constant 0 : i32
    return %c0_i32, %c0_i32_0 : i32, i32
  }
  func.func @transform_5(%arg0: i32, %arg1: i32) -> (i32, i32) {
    %c0_i32 = arith.constant 0 : i32
    %c0_i32_0 = arith.constant 0 : i32
    return %arg0, %c0_i32 : i32, i32
  }
}

</mosaic_0001>

<bundles_post_ra>
// kernel: tpu_custom_call.1
= control target key start
LH: loop header
LB: loop body
LE: loop exit
PB: predicated region body
PF: predicated region fallthrough
CT: control target
= control target key end

     0   :  { %10 = vsyncpa [#allocation4], 0  ;;  %s1799_s0 = inlined_call_operand.hbm [shape: f32[2,8,1024], index: 0, kind: input, shape index: {}]   ;;  %s1800_s1 = inlined_call_operand.hbm [shape: f32[1024,256], index: 1, kind: input, shape index: {}]   ;;  %s1801_s2 = inlined_call_operand.vmem [shape: f32[1,256], index: 2, kind: input, shape index: {}]   ;;  %s1802_s3 = inlined_call_operand.hbm [shape: f32[256,128], index: 3, kind: input, shape index: {}]   ;;  %s1803_s4 = inlined_call_operand.vmem [shape: f32[1,128], index: 4, kind: input, shape index: {}]   ;;  %s1804_s5 = inlined_call_operand.hbm [shape: f32[2,128], index: 5, kind: output, shape index: {}]  }
   0x1   :  { %11 = vsyncpa [#allocation7], 0 }
   0x2   :  { %12 = vsyncpa [#allocation5], 0  ;;  %s1464_s18 = smov [#allocation6]   ;;  %s1370_s22 = scalar_lea.hbm %s1800_s1, 32768 }
   0x3   :  { %s30_s19 = sshll.u32 %s1464_s18, 4  ;;  %p1371_p0 = scmp.ne.s32.totalorder %s1800_s1, %s1370_s22  ;;  %s31_s19 = int_to_ptr.vmem [resolvable:$true] %s30_s19 }
   0x4   :  { %p1374_p1 = scmp.lt.u32.totalorder %s1370_s22, %s1800_s1 }
   0x6   :  { %p1376_p2 = pnand %p1374_p1, %p1371_p0 }
   0x8   :  { %1379 = shalt.err (!%p1376_p2)
}
   0x9   :  { %s1380_s27 = scalar_lea.vmem %s31_s19, 32768  ;;  %p1385_p4 = scmp.lt.s32.totalorder %s31_s19, %s31_s19 }
   0xa   :  { %p1381_p3 = scmp.ne.s32.totalorder %s31_s19, %s1380_s27  ;;  %p1386_p5 = scmp.lt.s32.totalorder %s1380_s27, %s1380_s27 }
   0xc   :  { %p1387_p6 = por %p1386_p5, %p1385_p4 }
   0xe   :  { %p1388_p7 = pnand %p1387_p6, %p1381_p3 }
  0x10   :  { %1391 = shalt.err (!%p1388_p7)
}
  0x11   :  { %s1465_s28 = smov 256   ;;  %s1466_s29 = smov 16  }
  0x12   :  { %36 = dma.hbm_to_vmem [thread:$0]  %s1800_s1, 32768, %s31_s19, [#allocation7], %s1465_s28, %s1465_s28, %s1466_s29  }
  0x13   :  { %s1467_s7 = smov [#allocation3]   ;;  %s1392_s11 = scalar_lea.hbm %s1799_s0, 2048 }
  0x14   :  { %s18_s8 = sshll.u32 %s1467_s7, 4  ;;  %p1393_p8 = scmp.ne.s32.totalorder %s1799_s0, %s1392_s11  ;;  %s19_s8 = int_to_ptr.vmem [resolvable:$true] %s18_s8 }
  0x15   :  { %p1396_p9 = scmp.lt.u32.totalorder %s1392_s11, %s1799_s0 }
  0x17   :  { %p1398_p10 = pnand %p1396_p9, %p1393_p8 }
  0x19   :  { %1401 = shalt.err (!%p1398_p10)
}
  0x1a   :  { %s1402_s16 = scalar_lea.vmem %s19_s8, 2048  ;;  %p1407_p12 = scmp.lt.s32.totalorder %s19_s8, %s19_s8 }
  0x1b   :  { %p1403_p11 = scmp.ne.s32.totalorder %s19_s8, %s1402_s16  ;;  %p1408_p13 = scmp.lt.s32.totalorder %s1402_s16, %s1402_s16 }
  0x1d   :  { %p1409_p0 = por %p1408_p13, %p1407_p12 }
  0x1f   :  { %p1410_p1 = pnand %p1409_p0, %p1403_p11 }
  0x21   :  { %1413 = shalt.err (!%p1410_p1)
}
  0x22   :  { %s1468_s1 = smov 1024   ;;  %s1469_s17 = smov 64  }
  0x23   :  { %24 = dma.hbm_to_vmem [thread:$0]  %s1799_s0, 2048, %s19_s8, [#allocation4], %s1468_s1, %s1468_s1, %s1469_s17  }
  0x24   :  { %s1470_s20 = smov [#allocation8]   ;;  %s1414_s24 = scalar_lea.hbm %s1802_s3, 4096 }
  0x25   :  { %s44_s21 = sshll.u32 %s1470_s20, 4  ;;  %p1415_p2 = scmp.ne.s32.totalorder %s1802_s3, %s1414_s24  ;;  %s45_s21 = int_to_ptr.vmem [resolvable:$true] %s44_s21 }
  0x26   :  { %p1418_p3 = scmp.lt.u32.totalorder %s1414_s24, %s1802_s3 }
  0x28   :  { %p1420_p4 = pnand %p1418_p3, %p1415_p2 }
  0x2a   :  { %1423 = shalt.err (!%p1420_p4)
}
  0x2b   :  { %s1424_s29 = scalar_lea.vmem %s45_s21, 4096  ;;  %p1429_p6 = scmp.lt.s32.totalorder %s45_s21, %s45_s21 }
  0x2c   :  { %p1425_p5 = scmp.ne.s32.totalorder %s45_s21, %s1424_s29  ;;  %p1430_p7 = scmp.lt.s32.totalorder %s1424_s29, %s1424_s29 }
  0x2e   :  { %p1431_p8 = por %p1430_p7, %p1429_p6 }
  0x30   :  { %p1432_p9 = pnand %p1431_p8, %p1425_p5 }
  0x32   :  { %1435 = shalt.err (!%p1432_p9)
}
  0x33   :  { %s1471_s0 = smov 128   ;;  %s1472_s30 = smov 8  }
  0x34   :  { %50 = dma.hbm_to_vmem [thread:$0]  %s1802_s3, 4096, %s45_s21, [#allocation7], %s1471_s0, %s1471_s0, %s1472_s30  }
  0x35   :  { %1458 = dma.done.wait [#allocation4], 2048  }
  0x36   :  { %1459 = vsyncadd [#allocation4], 4294965248 }
  0x37   :  { %1460 = dma.done.wait [#allocation7], 36864  }
  0x38   :  { %1461 = vsyncadd [#allocation7], 4294930432  ;;  %v300_v0 = vld [vmem:[#allocation6 + $0x8] sm:$0xff]  ;;  %v302_v1 = vld [vmem:[#allocation6 + $0x18] sm:$0xff]  ;;  %vm271_vm0 = vcmask 1041409   ;;  %vm273_vm1 = vcmask 1043459  }
  0x39   :  { %v428_v2 = vld [vmem:[#allocation6 + $0x408] sm:$0xff]  ;;  %v1059_v3 = vpack.c.bf16 %v302_v1, %v300_v0  ;;  %v430_v4 = vld [vmem:[#allocation6 + $0x418] sm:$0xff]  ;;  %v299_v5 = vld [vmem:[#allocation6] sm:$0xff]  ;;  %vm275_vm2 = vcmask 1045509   ;;  %vm277_vm3 = vcmask 1047559  }
  0x3a   :  { %v301_v6 = vld [vmem:[#allocation6 + $0x10] sm:$0xff]  ;;  %v1187_v7 = vpack.c.bf16 %v430_v4, %v428_v2  ;;  %v427_v9 = vld [vmem:[#allocation6 + $0x400] sm:$0xff]  ;;  %v304_v11 = vld [vmem:[#allocation6 + $0x28] sm:$0xff] }
  0x3b   :  { %v1061_v8 = vpack.c.bf16 %v301_v6, %v299_v5  ;;  %v429_v10 = vld [vmem:[#allocation6 + $0x410] sm:$0xff]  ;;  %1060 = vmatprep.subr.bf16.mxu1 %v1059_v3  ;;  %v306_v13 = vld [vmem:[#allocation6 + $0x38] sm:$0xff]  ;;  %v432_v14 = vld [vmem:[#allocation6 + $0x428] sm:$0xff] }
  0x3c   :  { %v1189_v12 = vpack.c.bf16 %v429_v10, %v427_v9  ;;  %v434_v15 = vld [vmem:[#allocation6 + $0x438] sm:$0xff]  ;;  %1188 = vmatprep.subr.bf16.mxu0 %v1187_v7  ;;  %v1063_v16 = vpack.c.bf16 %v306_v13, %v304_v11  ;;  %v303_v18 = vld [vmem:[#allocation6 + $0x20] sm:$0xff]  ;;  %v305_v19 = vld [vmem:[#allocation6 + $0x30] sm:$0xff] }
  0x3d   :  { %1062 = vmatpush1.bf16.msra.mxu1 %v1061_v8  ;;  %v1191_v17 = vpack.c.bf16 %v434_v15, %v432_v14  ;;  %v431_v20 = vld [vmem:[#allocation6 + $0x420] sm:$0xff]  ;;  %v1065_v21 = vpack.c.bf16 %v305_v19, %v303_v18  ;;  %v433_v22 = vld [vmem:[#allocation6 + $0x430] sm:$0xff]  ;;  %v308_v23 = vld [vmem:[#allocation6 + $0x48] sm:$0xff] }
  0x3e   :  { %1190 = vmatpush1.bf16.msra.mxu0 %v1189_v12  ;;  %v310_v24 = vld [vmem:[#allocation6 + $0x58] sm:$0xff]  ;;  %1064 = vmatprep.subr.bf16.mxu1 %v1063_v16  ;;  %v1193_v25 = vpack.c.bf16 %v433_v22, %v431_v20  ;;  %v436_v27 = vld [vmem:[#allocation6 + $0x448] sm:$0xff]  ;;  %v307_v29 = vld [vmem:[#allocation6 + $0x40] sm:$0xff] }
  0x3f   :  { %1192 = vmatprep.subr.bf16.mxu0 %v1191_v17  ;;  %v1067_v26 = vpack.c.bf16 %v310_v24, %v308_v23  ;;  %v438_v28 = vld [vmem:[#allocation6 + $0x458] sm:$0xff]  ;;  %v309_v31 = vld [vmem:[#allocation6 + $0x50] sm:$0xff]  ;;  %v435_v32 = vld [vmem:[#allocation6 + $0x440] sm:$0xff] }
  0x40   :  { %v1195_v30 = vpack.c.bf16 %v438_v28, %v436_v27  ;;  %v437_v33 = vld [vmem:[#allocation6 + $0x450] sm:$0xff]  ;;  %v1069_v34 = vpack.c.bf16 %v309_v31, %v307_v29  ;;  %v312_v35 = vld [vmem:[#allocation6 + $0x68] sm:$0xff]  ;;  %v314_v36 = vld [vmem:[#allocation6 + $0x78] sm:$0xff] }
  0x41   :  { %1066 = vmatpush1.bf16.msra.mxu1 %v1065_v21  ;;  %v440_v37 = vld [vmem:[#allocation6 + $0x468] sm:$0xff]  ;;  %v1197_v38 = vpack.c.bf16 %v437_v33, %v435_v32  ;;  %v1071_v39 = vpack.c.bf16 %v314_v36, %v312_v35  ;;  %v442_v40 = vld [vmem:[#allocation6 + $0x478] sm:$0xff]  ;;  %v311_v41 = vld [vmem:[#allocation6 + $0x60] sm:$0xff] }
  0x42   :  { %1194 = vmatpush1.bf16.msra.mxu0 %v1193_v25  ;;  %1068 = vmatprep.subr.bf16.mxu1 %v1067_v26  ;;  %v313_v42 = vld [vmem:[#allocation6 + $0x70] sm:$0xff]  ;;  %v1199_v43 = vpack.c.bf16 %v442_v40, %v440_v37  ;;  %v439_v44 = vld [vmem:[#allocation6 + $0x460] sm:$0xff]  ;;  %v316_v46 = vld [vmem:[#allocation6 + $0x88] sm:$0xff] }
  0x43   :  { %1196 = vmatprep.subr.bf16.mxu0 %v1195_v30  ;;  %v441_v45 = vld [vmem:[#allocation6 + $0x470] sm:$0xff]  ;;  %v318_v47 = vld [vmem:[#allocation6 + $0x98] sm:$0xff]  ;;  %v444_v48 = vld [vmem:[#allocation6 + $0x488] sm:$0xff]  ;;  %v1073_v50 = vpack.c.bf16 %v313_v42, %v311_v41 }
  0x44   :  { %v446_v49 = vld [vmem:[#allocation6 + $0x498] sm:$0xff]  ;;  %v1201_v51 = vpack.c.bf16 %v441_v45, %v439_v44  ;;  %v1075_v52 = vpack.c.bf16 %v318_v47, %v316_v46  ;;  %v315_v53 = vld [vmem:[#allocation6 + $0x80] sm:$0xff]  ;;  %v317_v54 = vld [vmem:[#allocation6 + $0x90] sm:$0xff]  ;;  %v1473_v45 = vmov 1983009808   ;;  %v203_v47 = vlaneseq }
  0x45   :  { %1070 = vmatpush1.bf16.msra.mxu1 %v1069_v34  ;;  %v443_v55 = vld [vmem:[#allocation6 + $0x480] sm:$0xff]  ;;  %v1203_v56 = vpack.c.bf16 %v446_v49, %v444_v48  ;;  %v445_v57 = vld [vmem:[#allocation6 + $0x490] sm:$0xff]  ;;  %v320_v58 = vld [vmem:[#allocation6 + $0xa8] sm:$0xff]  ;;  %v1077_v62 = vpack.c.bf16 %v317_v54, %v315_v53  ;;  %v1541_v46 = vunpack.c.l.s4 %v1473_v45 }
  0x46   :  { %1198 = vmatpush1.bf16.msra.mxu0 %v1197_v38  ;;  %1072 = vmatprep.subr.bf16.mxu1 %v1071_v39  ;;  %v322_v59 = vld [vmem:[#allocation6 + $0xb8] sm:$0xff]  ;;  %v448_v60 = vld [vmem:[#allocation6 + $0x4a8] sm:$0xff]  ;;  %v1205_v63 = vpack.c.bf16 %v445_v57, %v443_v55  ;;  %v319_v1 = vld [vmem:[#allocation6 + $0xa0] sm:$0xff] }
  0x47   :  { %1200 = vmatprep.subr.bf16.mxu0 %v1199_v43  ;;  %v450_v61 = vld [vmem:[#allocation6 + $0x4b8] sm:$0xff]  ;;  %v1079_v0 = vpack.c.bf16 %v322_v59, %v320_v58  ;;  %v321_v2 = vld [vmem:[#allocation6 + $0xb0] sm:$0xff]  ;;  %v447_v3 = vld [vmem:[#allocation6 + $0x4a0] sm:$0xff] }
  0x48   :  { %v1207_v4 = vpack.c.bf16 %v450_v61, %v448_v60  ;;  %v449_v5 = vld [vmem:[#allocation6 + $0x4b0] sm:$0xff]  ;;  %v324_v6 = vld [vmem:[#allocation6 + $0xc8] sm:$0xff]  ;;  %v326_v7 = vld [vmem:[#allocation6 + $0xd8] sm:$0xff]  ;;  %v1081_v10 = vpack.c.bf16 %v321_v2, %v319_v1 }
  0x49   :  { %1074 = vmatpush1.bf16.msra.mxu1 %v1073_v50  ;;  %v452_v8 = vld [vmem:[#allocation6 + $0x4c8] sm:$0xff]  ;;  %v454_v9 = vld [vmem:[#allocation6 + $0x4d8] sm:$0xff]  ;;  %v1209_v11 = vpack.c.bf16 %v449_v5, %v447_v3  ;;  %v1083_v12 = vpack.c.bf16 %v326_v7, %v324_v6  ;;  %v323_v13 = vld [vmem:[#allocation6 + $0xc0] sm:$0xff] }
  0x4a   :  { %1202 = vmatpush1.bf16.msra.mxu0 %v1201_v51  ;;  %1076 = vmatprep.subr.bf16.mxu1 %v1075_v52  ;;  %v325_v14 = vld [vmem:[#allocation6 + $0xd0] sm:$0xff]  ;;  %v451_v15 = vld [vmem:[#allocation6 + $0x4c0] sm:$0xff]  ;;  %v1211_v16 = vpack.c.bf16 %v454_v9, %v452_v8  ;;  %v328_v18 = vld [vmem:[#allocation6 + $0xe8] sm:$0xff]  ;;  %v202_v9 = vunpack.c.0.s8 %v1541_v46 }
  0x4b   :  { %1204 = vmatprep.subr.bf16.mxu0 %v1203_v56  ;;  %v453_v17 = vld [vmem:[#allocation6 + $0x4d0] sm:$0xff]  ;;  %v330_v19 = vld [vmem:[#allocation6 + $0xf8] sm:$0xff]  ;;  %v456_v20 = vld [vmem:[#allocation6 + $0x4e8] sm:$0xff]  ;;  %v1085_v22 = vpack.c.bf16 %v325_v14, %v323_v13 }
  0x4c   :  { %v458_v21 = vld [vmem:[#allocation6 + $0x4f8] sm:$0xff]  ;;  %v1213_v23 = vpack.c.bf16 %v453_v17, %v451_v15  ;;  %v1087_v24 = vpack.c.bf16 %v330_v19, %v328_v18  ;;  %v327_v25 = vld [vmem:[#allocation6 + $0xe0] sm:$0xff]  ;;  %v329_v26 = vld [vmem:[#allocation6 + $0xf0] sm:$0xff] }
  0x4d   :  { %1078 = vmatpush1.bf16.msra.mxu1 %v1077_v62  ;;  %v455_v27 = vld [vmem:[#allocation6 + $0x4e0] sm:$0xff]  ;;  %v1215_v28 = vpack.c.bf16 %v458_v21, %v456_v20  ;;  %v457_v29 = vld [vmem:[#allocation6 + $0x4f0] sm:$0xff]  ;;  %v332_v30 = vld [vmem:[#allocation6 + $0x108] sm:$0xff]  ;;  %v1089_v34 = vpack.c.bf16 %v329_v26, %v327_v25 }
  0x4e   :  { %1206 = vmatpush1.bf16.msra.mxu0 %v1205_v63  ;;  %1080 = vmatprep.subr.bf16.mxu1 %v1079_v0  ;;  %v334_v31 = vld [vmem:[#allocation6 + $0x118] sm:$0xff]  ;;  %v460_v32 = vld [vmem:[#allocation6 + $0x508] sm:$0xff]  ;;  %v331_v35 = vld [vmem:[#allocation6 + $0x100] sm:$0xff]  ;;  %v1217_v36 = vpack.c.bf16 %v457_v29, %v455_v27 }
  0x4f   :  { %1208 = vmatprep.subr.bf16.mxu0 %v1207_v4  ;;  %v462_v33 = vld [vmem:[#allocation6 + $0x518] sm:$0xff]  ;;  %v1091_v37 = vpack.c.bf16 %v334_v31, %v332_v30  ;;  %v333_v38 = vld [vmem:[#allocation6 + $0x110] sm:$0xff]  ;;  %v459_v39 = vld [vmem:[#allocation6 + $0x500] sm:$0xff] }
  0x50   :  { %v461_v40 = vld [vmem:[#allocation6 + $0x510] sm:$0xff]  ;;  %v1219_v41 = vpack.c.bf16 %v462_v33, %v460_v32  ;;  %v336_v42 = vld [vmem:[#allocation6 + $0x128] sm:$0xff]  ;;  %v338_v43 = vld [vmem:[#allocation6 + $0x138] sm:$0xff]  ;;  %v1093_v51 = vpack.c.bf16 %v333_v38, %v331_v35 }
  0x51   :  { %1082 = vmatpush1.bf16.msra.mxu1 %v1081_v10  ;;  %v464_v44 = vld [vmem:[#allocation6 + $0x528] sm:$0xff]  ;;  %v466_v48 = vld [vmem:[#allocation6 + $0x538] sm:$0xff]  ;;  %v1543_v49 = vld [vmem:[#allocation6 + $0x120] sm:$0xff]  ;;  %v1221_v56 = vpack.c.bf16 %v461_v40, %v459_v39  ;;  %v1095_v57 = vpack.c.bf16 %v338_v43, %v336_v42  ;;  %v1584_v10 = vshrl.u32 %v203_v47, 7 }
  0x52   :  { %1210 = vmatpush1.bf16.msra.mxu0 %v1209_v11  ;;  %1084 = vmatprep.subr.bf16.mxu1 %v1083_v12  ;;  %v1545_v50 = vld [vmem:[#allocation6 + $0x130] sm:$0xff]  ;;  %v1547_v52 = vld [vmem:[#allocation6 + $0x520] sm:$0xff]  ;;  %v1551_v54 = vld [vmem:[#allocation6 + $0x148] sm:$0xff]  ;;  %v1223_v0 = vpack.c.bf16 %v466_v48, %v464_v44 }
  0x53   :  { %1212 = vmatprep.subr.bf16.mxu0 %v1211_v16  ;;  %v1549_v53 = vld [vmem:[#allocation6 + $0x530] sm:$0xff]  ;;  %v1553_v55 = vld [vmem:[#allocation6 + $0x158] sm:$0xff]  ;;  %v1555_v58 = vld [vmem:[#allocation6 + $0x548] sm:$0xff]  ;;  %v1097_v19 = vpack.c.bf16 %v1545_v50, %v1543_v49  ;;  %v1641_v38 = vsub.s32 %v202_v9, %v1584_v10 }
  0x54   :  { %v1557_v59 = vld [vmem:[#allocation6 + $0x558] sm:$0xff]  ;;  %v1559_v60 = vld [vmem:[#allocation6 + $0x140] sm:$0xff]  ;;  %v1561_v61 = vld [vmem:[#allocation6 + $0x150] sm:$0xff]  ;;  %v1225_v26 = vpack.c.bf16 %v1549_v53, %v1547_v52  ;;  %v1099_v27 = vpack.c.bf16 %v1553_v55, %v1551_v54 }
  0x55   :  { %1086 = vmatpush1.bf16.msra.mxu1 %v1085_v22  ;;  %v1563_v62 = vld [vmem:[#allocation6 + $0x540] sm:$0xff]  ;;  %v1565_v63 = vld [vmem:[#allocation6 + $0x550] sm:$0xff]  ;;  %v1567_v1 = vld [vmem:[#allocation6 + $0x168] sm:$0xff]  ;;  %v1227_v32 = vpack.c.bf16 %v1557_v59, %v1555_v58  ;;  %v1101_v33 = vpack.c.bf16 %v1561_v61, %v1559_v60 }
  0x56   :  { %1214 = vmatpush1.bf16.msra.mxu0 %v1213_v23  ;;  %1088 = vmatprep.subr.bf16.mxu1 %v1087_v24  ;;  %v1569_v2 = vld [vmem:[#allocation6 + $0x178] sm:$0xff]  ;;  %v1571_v3 = vld [vmem:[#allocation6 + $0x568] sm:$0xff]  ;;  %v1575_v5 = vld [vmem:[#allocation6 + $0x160] sm:$0xff] }
  0x57   :  { %1216 = vmatprep.subr.bf16.mxu0 %v1215_v28  ;;  %v1573_v4 = vld [vmem:[#allocation6 + $0x578] sm:$0xff]  ;;  %v1577_v6 = vld [vmem:[#allocation6 + $0x170] sm:$0xff]  ;;  %v1579_v7 = vld [vmem:[#allocation6 + $0x560] sm:$0xff]  ;;  %v1103_v39 = vpack.c.bf16 %v1569_v2, %v1567_v1 }
  0x58   :  { %v1581_v8 = vld [vmem:[#allocation6 + $0x570] sm:$0xff]  ;;  %v1586_v11 = vld [vmem:[#allocation6 + $0x188] sm:$0xff]  ;;  %v1588_v12 = vld [vmem:[#allocation6 + $0x198] sm:$0xff]  ;;  %v1231_v40 = vpack.c.bf16 %v1573_v4, %v1571_v3 }
  0x59   :  { %1090 = vmatpush1.bf16.msra.mxu1 %v1089_v34  ;;  %v1590_v13 = vld [vmem:[#allocation6 + $0x588] sm:$0xff]  ;;  %v1592_v14 = vld [vmem:[#allocation6 + $0x598] sm:$0xff]  ;;  %v1594_v15 = vld [vmem:[#allocation6 + $0x180] sm:$0xff]  ;;  %v1229_v34 = vpack.c.bf16 %v1565_v63, %v1563_v62  ;;  %v1233_v42 = vpack.c.bf16 %v1581_v8, %v1579_v7  ;;  %v1107_v46 = vpack.c.bf16 %v1588_v12, %v1586_v11 }
  0x5a   :  { %1218 = vmatpush1.bf16.msra.mxu0 %v1217_v36  ;;  %1092 = vmatprep.subr.bf16.mxu1 %v1091_v37  ;;  %v1596_v16 = vld [vmem:[#allocation6 + $0x190] sm:$0xff]  ;;  %v1598_v17 = vld [vmem:[#allocation6 + $0x580] sm:$0xff]  ;;  %v1604_v20 = vld [vmem:[#allocation6 + $0x1a8] sm:$0xff]  ;;  %v1235_v47 = vpack.c.bf16 %v1592_v14, %v1590_v13 }
  0x5b   :  { %1220 = vmatprep.subr.bf16.mxu0 %v1219_v41  ;;  %v1600_v18 = vld [vmem:[#allocation6 + $0x590] sm:$0xff]  ;;  %v1606_v21 = vld [vmem:[#allocation6 + $0x1b8] sm:$0xff]  ;;  %v1608_v22 = vld [vmem:[#allocation6 + $0x5a8] sm:$0xff]  ;;  %v1105_v41 = vpack.c.bf16 %v1577_v6, %v1575_v5  ;;  %v1109_v48 = vpack.c.bf16 %v1596_v16, %v1594_v15 }
  0x5c   :  { %v1610_v23 = vld [vmem:[#allocation6 + $0x5b8] sm:$0xff]  ;;  %v1612_v24 = vld [vmem:[#allocation6 + $0x1a0] sm:$0xff]  ;;  %v1614_v25 = vld [vmem:[#allocation6 + $0x1b0] sm:$0xff] }
  0x5d   :  { %1094 = vmatpush1.bf16.msra.mxu1 %v1093_v51  ;;  %v1620_v28 = vld [vmem:[#allocation6 + $0x5a0] sm:$0xff]  ;;  %v1622_v29 = vld [vmem:[#allocation6 + $0x5b0] sm:$0xff]  ;;  %v1624_v30 = vld [vmem:[#allocation6 + $0x1c8] sm:$0xff] }
  0x5e   :  { %1222 = vmatpush1.bf16.msra.mxu0 %v1221_v56  ;;  %1096 = vmatprep.subr.bf16.mxu1 %v1095_v57  ;;  %v1626_v31 = vld [vmem:[#allocation6 + $0x1d8] sm:$0xff]  ;;  %v1634_v35 = vld [vmem:[#allocation6 + $0x5c8] sm:$0xff]  ;;  %v1638_v37 = vld [vmem:[#allocation6 + $0x1c0] sm:$0xff] }
  0x5f   :  { %1224 = vmatprep.subr.bf16.mxu0 %v1223_v0  ;;  %v1636_v36 = vld [vmem:[#allocation6 + $0x5d8] sm:$0xff]  ;;  %v1651_v43 = vld [vmem:[#allocation6 + $0x1d0] sm:$0xff]  ;;  %v1653_v44 = vld [vmem:[#allocation6 + $0x5c0] sm:$0xff] }
  0x60   :  { %v1655_v45 = vld [vmem:[#allocation6 + $0x5d0] sm:$0xff]  ;;  %v1665_v50 = vld [vmem:[#allocation6 + $0x1e8] sm:$0xff]  ;;  %v1667_v51 = vld [vmem:[#allocation6 + $0x1f8] sm:$0xff] }
  0x61   :  { %1098 = vmatpush1.bf16.msra.mxu1 %v1097_v19  ;;  %v1669_v52 = vld [vmem:[#allocation6 + $0x5e8] sm:$0xff]  ;;  %v1677_v56 = vld [vmem:[#allocation6 + $0x5f8] sm:$0xff]  ;;  %v1679_v57 = vld [vmem:[#allocation6 + $0x1e0] sm:$0xff] }
  0x62   :  { %1226 = vmatpush1.bf16.msra.mxu0 %v1225_v26  ;;  %1100 = vmatprep.subr.bf16.mxu1 %v1099_v27  ;;  %v1681_v58 = vld [vmem:[#allocation6 + $0x1f0] sm:$0xff]  ;;  %v68_v63 = vld [vmem:[#allocation3] sm:$0xff]  ;;  %v69_v3 = vld [vmem:[#allocation3 + $0x8] sm:$0xff] }
  0x63   :  { %1228 = vmatprep.subr.bf16.mxu0 %v1227_v32  ;;  %v70_v4 = vld [vmem:[#allocation3 + $0x10] sm:$0xff]  ;;  %v71_v5 = vld [vmem:[#allocation3 + $0x18] sm:$0xff]  ;;  %v84_v6 = vrot.slane %v68_v63, 4  ;;  %v76_v8 = vld [vmem:[#allocation3 + $0x40] sm:$0xff]  ;;  %v90_v12 = vrot.slane %v69_v3, 4 }
  0x64   :  { %v77_v9 = vld [vmem:[#allocation3 + $0x48] sm:$0xff]  ;;  %v78_v11 = vld [vmem:[#allocation3 + $0x50] sm:$0xff]  ;;  %v96_v13 = vrot.slane %v70_v4, 4  ;;  %v102_v14 = vrot.slane %v71_v5, 4  ;;  %v79_v19 = vld [vmem:[#allocation3 + $0x58] sm:$0xff]  ;;  %v132_v27 = vrot.slane %v76_v8, 4 }
  0x65   :  { %1102 = vmatpush1.bf16.msra.mxu1 %v1101_v33  ;;  %v85_v26 = vadd.f32 %v84_v6, %v68_v63  ;;  %v138_v32 = vrot.slane %v77_v9, 4  ;;  %v144_v2 = vrot.slane %v78_v11, 4  ;;  %v91_v1 = vadd.f32 %v90_v12, %v69_v3 }
  0x66   :  { %1230 = vmatpush1.bf16.msra.mxu0 %v1229_v34  ;;  %1104 = vmatprep.subr.bf16.mxu1 %v1103_v39  ;;  %v97_v0 = vadd.f32 %v96_v13, %v70_v4  ;;  %v103_v33 = vadd.f32 %v102_v14, %v71_v5  ;;  %v150_v62 = vrot.slane %v79_v19, 4  ;;  %v133_v7 = vadd.f32 %v132_v27, %v76_v8 }
  0x67   :  { %1232 = vmatprep.subr.bf16.mxu0 %v1231_v40  ;;  %v86_v61 = vrot.slane %v85_v26, 2  ;;  %v139_v60 = vadd.f32 %v138_v32, %v77_v9  ;;  %v145_v59 = vadd.f32 %v144_v2, %v78_v11  ;;  %v92_v55 = vrot.slane %v91_v1, 2  ;;  %v73_v11 = vld [vmem:[#allocation3 + $0x28] sm:$0xff] }
  0x68   :  { %v98_v54 = vrot.slane %v97_v0, 2  ;;  %v104_v53 = vrot.slane %v103_v33, 2  ;;  %v151_v34 = vadd.f32 %v150_v62, %v79_v19  ;;  %v134_v63 = vrot.slane %v133_v7, 2 }
  0x69   :  { %1106 = vmatpush1.bf16.msra.mxu1 %v1105_v41  ;;  %v87_v39 = vadd.f32 %v86_v61, %v85_v26  ;;  %v140_v6 = vrot.slane %v139_v60, 2  ;;  %v146_v49 = vrot.slane %v145_v59, 2  ;;  %v93_v40 = vadd.f32 %v92_v55, %v91_v1  ;;  %v1702_v41 = vld [vmem:[#allocation6 + $0x5e0] sm:$0xff] }
  0x6a   :  { %1234 = vmatpush1.bf16.msra.mxu0 %v1233_v42  ;;  %1108 = vmatprep.subr.bf16.mxu1 %v1107_v46  ;;  %v99_v3 = vadd.f32 %v98_v54, %v97_v0  ;;  %v105_v4 = vadd.f32 %v104_v53, %v103_v33  ;;  %v152_v5 = vrot.slane %v151_v34, 2  ;;  %v135_v8 = vadd.f32 %v134_v63, %v133_v7  ;;  %v1704_v42 = vld [vmem:[#allocation6 + $0x5f0] sm:$0xff]  ;;  %v366_v63 = vld [vmem:[#allocation6 + $0x218] sm:$0xff] }
  0x6b   :  { %1236 = vmatprep.subr.bf16.mxu0 %v1235_v47  ;;  %v88_v12 = vrot.slane %v87_v39, 1  ;;  %v141_v9 = vadd.f32 %v140_v6, %v139_v60  ;;  %v147_v2 = vadd.f32 %v146_v49, %v145_v59  ;;  %v94_v46 = vrot.slane %v93_v40, 1  ;;  %v80_v6 = vld [vmem:[#allocation3 + $0x60] sm:$0xff] }
  0x6c   :  { %v100_v61 = vrot.slane %v99_v3, 1  ;;  %v106_v62 = vrot.slane %v105_v4, 1  ;;  %v153_v47 = vadd.f32 %v152_v5, %v151_v34  ;;  %v1805_v53 = vpack.c.bf16 %v1600_v18, %v1598_v17  ;;  %v74_v17 = vld [vmem:[#allocation3 + $0x30] sm:$0xff]  ;;  %v75_v18 = vld [vmem:[#allocation3 + $0x38] sm:$0xff]  ;;  %v81_v5 = vld [vmem:[#allocation3 + $0x68] sm:$0xff] }
  0x6d   :  { %1110 = vmatpush1.bf16.msra.mxu1 %v1109_v48  ;;  %v1806_v54 = vpack.c.bf16 %v1606_v21, %v1604_v20  ;;  %v89_v49 = vadd.f32 %v88_v12, %v87_v39  ;;  %v136_v55 = vrot.slane %v135_v8, 1  ;;  %v142_v15 = vrot.slane %v141_v9, 1  ;;  %v72_v48 = vld [vmem:[#allocation3 + $0x20] sm:$0xff]  ;;  %v364_v39 = vld [vmem:[#allocation6 + $0x208] sm:$0xff] }
  0x6e   :  { %1238 = vmatpush1.bf16.msra.mxu0 %v1805_v53  ;;  %v148_v16 = vrot.slane %v147_v2, 1  ;;  %v1807_v59 = vpack.c.bf16 %v1610_v23, %v1608_v22  ;;  %v95_v60 = vadd.f32 %v94_v46, %v93_v40  ;;  %v101_v0 = vadd.f32 %v100_v61, %v99_v3 }
  0x6f   :  { %1112 = vmatprep.subr.bf16.mxu1 %v1806_v54  ;;  %v107_v1 = vadd.f32 %v106_v62, %v105_v4  ;;  %v154_v7 = vrot.slane %v153_v47, 1  ;;  %v1249_v20 = vpack.c.bf16 %v1704_v42, %v1702_v41  ;;  %v137_v21 = vadd.f32 %v136_v55, %v135_v8 }
  0x70   :  { %1240 = vmatprep.subr.bf16.mxu0 %v1807_v59  ;;  %v143_v13 = vadd.f32 %v142_v15, %v141_v9  ;;  %v149_v14 = vadd.f32 %v148_v16, %v147_v2  ;;  %v1808_v19 = vpack.c.bf16 %v1614_v25, %v1612_v24  ;;  %v198_v23 = vcombine.low %v89_v49, %v95_v60 }
  0x71   :  { %v155_v22 = vadd.f32 %v154_v7, %v153_v47  ;;  %v199_v26 = vcombine.low %v101_v0, %v107_v1  ;;  %v108_v27 = vrot.slane %v72_v48, 4  ;;  %v1809_v32 = vpack.c.bf16 %v1622_v29, %v1620_v28  ;;  %v83_v7 = vld [vmem:[#allocation3 + $0x78] sm:$0xff] }
  0x72   :  { %1114 = vmatpush1.bf16.msra.mxu1 %v1808_v19  ;;  %v1810_v33 = vpack.c.bf16 %v1626_v31, %v1624_v30  ;;  %v232_v34 = vcombine.low %v137_v21, %v143_v13  ;;  %v114_v40 = vrot.slane %v73_v11, 4  ;;  %v120_v24 = vrot.slane %v74_v17, 4  ;;  %v82_v31 = vld [vmem:[#allocation3 + $0x70] sm:$0xff] }
  0x73   :  { %1242 = vmatpush1.bf16.msra.mxu0 %v1809_v32  ;;  %v126_v25 = vrot.slane %v75_v18, 4  ;;  %v1811_v3 = vpack.c.bf16 %v1636_v36, %v1634_v35  ;;  %v206_v4 = vrot.slane %v198_v23, %v1641_v38  ;;  %v213_v28 = vrot.slane %v199_v26, %v1641_v38 }
  0x74   :  { %1116 = vmatprep.subr.bf16.mxu1 %v1810_v33  ;;  %v233_v29 = vcombine.low %v149_v14, %v155_v22  ;;  %v109_v12 = vadd.f32 %v108_v27, %v72_v48  ;;  %v240_v30 = vrot.slane %v232_v34, %v1641_v38  ;;  %v115_v8 = vadd.f32 %v114_v40, %v73_v11  ;;  %v492_v22 = vld [vmem:[#allocation6 + $0x608] sm:$0xff]  ;;  %v363_v40 = vld [vmem:[#allocation6 + $0x200] sm:$0xff] }
  0x75   :  { %1244 = vmatprep.subr.bf16.mxu0 %v1811_v3  ;;  %v121_v9 = vadd.f32 %v120_v24, %v74_v17  ;;  %v127_v2 = vadd.f32 %v126_v25, %v75_v18  ;;  %v1812_v41 = vpack.c.bf16 %v1651_v43, %v1638_v37  ;;  %v1123_v36 = vpack.c.bf16 %v366_v63, %v364_v39  ;;  %v365_v24 = vld [vmem:[#allocation6 + $0x210] sm:$0xff] }
  0x76   :  { %v247_v35 = vrot.slane %v233_v29, %v1641_v38  ;;  %v110_v42 = vrot.slane %v109_v12, 2  ;;  %v156_v46 = vrot.slane %v80_v6, 4  ;;  %v1813_v61 = vpack.c.bf16 %v1655_v45, %v1653_v44  ;;  %v368_v29 = vld [vmem:[#allocation6 + $0x228] sm:$0xff] }
  0x77   :  { %1118 = vmatpush1.bf16.msra.mxu1 %v1812_v41  ;;  %v1814_v62 = vpack.c.bf16 %v1667_v51, %v1665_v50  ;;  %v116_v47 = vrot.slane %v115_v8, 2  ;;  %v122_v53 = vrot.slane %v121_v9, 2  ;;  %v128_v54 = vrot.slane %v127_v2, 2 }
  0x78   :  { %1246 = vmatpush1.bf16.msra.mxu0 %v1813_v61  ;;  %v162_v49 = vrot.slane %v81_v5, 4  ;;  %v1815_v37 = vpack.c.bf16 %v1677_v56, %v1669_v52  ;;  %v214_v43 = vcombine.low %v206_v4, %v213_v28  ;;  %v248_v55 = vcombine.low %v240_v30, %v247_v35  ;;  %v372_v61 = vld [vmem:[#allocation6 + $0x248] sm:$0xff] }
  0x79   :  { %1120 = vmatprep.subr.bf16.mxu1 %v1814_v62  ;;  %v157_v15 = vadd.f32 %v156_v46, %v80_v6  ;;  %v168_v16 = vrot.slane %v82_v31, 4  ;;  %v111_v48 = vadd.f32 %v110_v42, %v109_v12  ;;  %v117_v59 = vadd.f32 %v116_v47, %v115_v8  ;;  %v369_v42 = vld [vmem:[#allocation6 + $0x230] sm:$0xff]  ;;  %v374_v62 = vld [vmem:[#allocation6 + $0x258] sm:$0xff] }
  0x7a   :  { %1248 = vmatprep.subr.bf16.mxu0 %v1815_v37  ;;  %v123_v44 = vadd.f32 %v122_v53, %v121_v9  ;;  %v163_v45 = vadd.f32 %v162_v49, %v81_v5  ;;  %v1816_v50 = vpack.c.bf16 %v1681_v58, %v1679_v57  ;;  %v270_v51 = vrot.slane %v248_v55, 7  ;;  %v370_v5 = vld [vmem:[#allocation6 + $0x238] sm:$0xff] }
  0x7b   :  { %v129_v60 = vadd.f32 %v128_v54, %v127_v2  ;;  %v158_v0 = vrot.slane %v157_v15, 2  ;;  %v169_v1 = vadd.f32 %v168_v16, %v82_v31  ;;  %v112_v21 = vrot.slane %v111_v48, 1  ;;  %v373_v16 = vld [vmem:[#allocation6 + $0x250] sm:$0xff] }
  0x7c   :  { %1122 = vmatpush1.bf16.msra.mxu1 %v1816_v50  ;;  %1250 = vmatpush1.bf16.msra.mxu0 %v1249_v20  ;;  %v164_v52 = vrot.slane %v163_v45, 2  ;;  %v272_v56 = vsel %vm271_vm0, %v270_v51, %v214_v43  ;;  %v118_v13 = vrot.slane %v117_v59, 1  ;;  %v124_v58 = vrot.slane %v123_v44, 1  ;;  %v494_v20 = vld [vmem:[#allocation6 + $0x618] sm:$0xff] }
  0x7d   :  { %1124 = vmatprep.subr.bf16.mxu1 %v1123_v36  ;;  %v159_v11 = vadd.f32 %v158_v0, %v157_v15  ;;  %v170_v17 = vrot.slane %v169_v1, 2  ;;  %v274_v18 = vsel %vm273_vm1, %v270_v51, %v272_v56  ;;  %v130_v14 = vrot.slane %v129_v60, 1  ;;  %v367_v36 = vld [vmem:[#allocation6 + $0x220] sm:$0xff]  ;;  %v377_v56 = vld [vmem:[#allocation6 + $0x270] sm:$0xff] }
  0x7e   :  { %v276_v57 = vsel %vm275_vm2, %v270_v51, %v274_v18  ;;  %v165_v19 = vadd.f32 %v164_v52, %v163_v45  ;;  %v174_v32 = vrot.slane %v83_v7, 4  ;;  %v113_v39 = vadd.f32 %v112_v21, %v111_v48  ;;  %v371_v15 = vld [vmem:[#allocation6 + $0x240] sm:$0xff]  ;;  %v376_v48 = vld [vmem:[#allocation6 + $0x268] sm:$0xff] }
  0x7f   :  { %v278_v23 = vsel %vm277_vm3, %v270_v51, %v276_v57  ;;  %v160_v26 = vrot.slane %v159_v11, 1  ;;  %v171_v27 = vadd.f32 %v170_v17, %v169_v1  ;;  %v1251_v6 = vpack.c.bf16 %v494_v20, %v492_v22  ;;  %v375_v52 = vld [vmem:[#allocation6 + $0x260] sm:$0xff]  ;;  %v384_v22 = vld [vmem:[#allocation6 + $0x2a8] sm:$0xff]  ;;  %v386_v20 = vld [vmem:[#allocation6 + $0x2b8] sm:$0xff] }
  0x80   :  { %v1752_v33 = vmul.f32 0.125, %v278_v23  ;;  %v166_v34 = vrot.slane %v165_v19, 1  ;;  %v175_v63 = vadd.f32 %v174_v32, %v83_v7  ;;  %v119_v3 = vadd.f32 %v118_v13, %v117_v59  ;;  %v378_v59 = vld [vmem:[#allocation6 + $0x278] sm:$0xff]  ;;  %v380_v7 = vld [vmem:[#allocation6 + $0x288] sm:$0xff] }
  0x81   :  { %v125_v4 = vadd.f32 %v124_v58, %v123_v44  ;;  %v131_v28 = vadd.f32 %v130_v14, %v129_v60  ;;  %v161_v12 = vadd.f32 %v160_v26, %v159_v11  ;;  %v172_v31 = vrot.slane %v171_v27, 1  ;;  %1252 = vmatprep.subr.bf16.mxu0 %v1251_v6  ;;  %v382_v11 = vld [vmem:[#allocation6 + $0x298] sm:$0xff]  ;;  %v379_v58 = vld [vmem:[#allocation6 + $0x280] sm:$0xff]  ;;  %v381_v14 = vld [vmem:[#allocation6 + $0x290] sm:$0xff] }
  0x82   :  { %v576_v25 = vrot.slane %v1752_v33, %v1641_v38  ;;  %v167_v30 = vadd.f32 %v166_v34, %v165_v19  ;;  %v176_v8 = vrot.slane %v175_v63, 2  ;;  %v1125_v2 = vpack.c.bf16 %v365_v24, %v363_v40  ;;  %v388_v40 = vld [vmem:[#allocation6 + $0x2c8] sm:$0xff]  ;;  %v390_v24 = vld [vmem:[#allocation6 + $0x2d8] sm:$0xff] }
  0x83   :  { %v1127_v35 = vpack.c.bf16 %v370_v5, %v368_v29  ;;  %v215_v46 = vcombine.low %v113_v39, %v119_v3  ;;  %v173_v47 = vadd.f32 %v172_v31, %v171_v27  ;;  %v216_v54 = vcombine.low %v125_v4, %v131_v28  ;;  %v383_v39 = vld [vmem:[#allocation6 + $0x2a0] sm:$0xff]  ;;  %v493_v4 = vld [vmem:[#allocation6 + $0x610] sm:$0xff]  ;;  %v496_v28 = vld [vmem:[#allocation6 + $0x628] sm:$0xff] }
  0x84   :  { %v584_v9 = vcombine.high %v576_v25, %v576_v25  ;;  %v177_v41 = vadd.f32 %v176_v8, %v175_v63  ;;  %v249_v49 = vcombine.low %v161_v12, %v167_v30  ;;  %v1129_v37 = vpack.c.bf16 %v369_v42, %v367_v36  ;;  %v385_v63 = vld [vmem:[#allocation6 + $0x2b0] sm:$0xff]  ;;  %v491_v3 = vld [vmem:[#allocation6 + $0x600] sm:$0xff]  ;;  %v498_v31 = vld [vmem:[#allocation6 + $0x638] sm:$0xff] }
  0x85   :  { %v1131_v55 = vpack.c.bf16 %v374_v62, %v372_v61  ;;  %v223_v44 = vrot.slane %v215_v46, %v1641_v38  ;;  %v230_v45 = vrot.slane %v216_v54, %v1641_v38  ;;  %v1133_v60 = vpack.c.bf16 %v373_v16, %v371_v15  ;;  %v495_v62 = vld [vmem:[#allocation6 + $0x620] sm:$0xff]  ;;  %v396_v16 = vld [vmem:[#allocation6 + $0x308] sm:$0xff] }
  0x86   :  { %675 = vmatprep.mubr.f32.mxu1 %v584_v9  ;;  %v178_v53 = vrot.slane %v177_v41, 1  ;;  %v257_v51 = vrot.slane %v249_v49, %v1641_v38  ;;  %v1135_v1 = vpack.c.bf16 %v378_v59, %v376_v48  ;;  %v1137_v21 = vpack.c.bf16 %v377_v56, %v375_v52  ;;  %v387_v9 = vld [vmem:[#allocation6 + $0x2c0] sm:$0xff]  ;;  %v502_v49 = vld [vmem:[#allocation6 + $0x658] sm:$0xff]  ;;  %v397_v52 = vld [vmem:[#allocation6 + $0x310] sm:$0xff] }
  0x87   :  { %676 = vmatmul.mubr.f32.vlgmr.msra.gmra.mrb[0].mxu1 %v576_v25  ;;  %v231_v17 = vcombine.low %v223_v44, %v230_v45  ;;  %v1139_v57 = vpack.c.bf16 %v382_v11, %v380_v7  ;;  %v569_v19 = vcombine.high %v1752_v33, %v1752_v33  ;;  %v1141_v27 = vpack.c.bf16 %v381_v14, %v379_v58  ;;  %v398_v48 = vld [vmem:[#allocation6 + $0x318] sm:$0xff]  ;;  %v499_v44 = vld [vmem:[#allocation6 + $0x640] sm:$0xff]  ;;  %v501_v45 = vld [vmem:[#allocation6 + $0x650] sm:$0xff] }
  0x88   :  { %1126 = vmatpush1.bf16.msra.mxu1 %v1125_v2  ;;  %v179_v43 = vadd.f32 %v178_v53, %v177_v41  ;;  %v1143_v34 = vpack.c.bf16 %v386_v20, %v384_v22  ;;  %v1145_v29 = vpack.c.bf16 %v385_v63, %v383_v39  ;;  %v1147_v8 = vpack.c.bf16 %v390_v24, %v388_v40  ;;  %v389_v2 = vld [vmem:[#allocation6 + $0x2d0] sm:$0xff]  ;;  %v392_v41 = vld [vmem:[#allocation6 + $0x2e8] sm:$0xff]  ;;  %v402_v7 = vld [vmem:[#allocation6 + $0x338] sm:$0xff] }
  0x89   :  { %1128 = vmatprep.subr.bf16.mxu1 %v1127_v35  ;;  %v1767_v33 = vrot.slane %v569_v19, %v1641_v38  ;;  %v394_v35 = vld [vmem:[#allocation6 + $0x2f8] sm:$0xff]  ;;  %v1253_v42 = vpack.c.bf16 %v493_v4, %v491_v3  ;;  %v1255_v61 = vpack.c.bf16 %v498_v31, %v496_v28  ;;  %v500_v53 = vld [vmem:[#allocation6 + $0x648] sm:$0xff]  ;;  %v1149_v54 = vpack.c.bf16 %v389_v2, %v387_v9  ;;  %v399_v19 = vld [vmem:[#allocation6 + $0x320] sm:$0xff] }
  0x8a   :  { %v250_v50 = vcombine.low %v173_v47, %v179_v43  ;;  %v497_v47 = vld [vmem:[#allocation6 + $0x630] sm:$0xff]  ;;  %v391_v43 = vld [vmem:[#allocation6 + $0x2e0] sm:$0xff]  ;;  %v1259_v59 = vpack.c.bf16 %v502_v49, %v500_v53  ;;  %v400_v56 = vld [vmem:[#allocation6 + $0x328] sm:$0xff]  ;;  %v1261_v11 = vpack.c.bf16 %v501_v45, %v499_v44 }
  0x8b   :  { %v585_v5 = vcombine.high %v1767_v33, %v1767_v33  ;;  %v510_v58 = vld [vmem:[#allocation6 + $0x698] sm:$0xff]  ;;  %v1159_v14 = vpack.c.bf16 %v402_v7, %v400_v56  ;;  %v401_v22 = vld [vmem:[#allocation6 + $0x330] sm:$0xff]  ;;  %v404_v20 = vld [vmem:[#allocation6 + $0x348] sm:$0xff] }
  0x8c   :  { %1130 = vmatpush1.bf16.msra.mxu1 %v1129_v37  ;;  %v264_v0 = vrot.slane %v250_v50, %v1641_v38  ;;  %v1151_v37 = vpack.c.bf16 %v394_v35, %v392_v41  ;;  %v504_v50 = vld [vmem:[#allocation6 + $0x668] sm:$0xff]  ;;  %v1161_v63 = vpack.c.bf16 %v401_v22, %v399_v19  ;;  %v403_v24 = vld [vmem:[#allocation6 + $0x340] sm:$0xff]  ;;  %v410_v4 = vld [vmem:[#allocation6 + $0x378] sm:$0xff] }
  0x8d   :  { %1132 = vmatprep.subr.bf16.mxu1 %v1131_v55  ;;  %746 = vmatprep.mubr.f32.mxu1 %v585_v5  ;;  %v393_v55 = vld [vmem:[#allocation6 + $0x2f0] sm:$0xff]  ;;  %v512_v39 = vld [vmem:[#allocation6 + $0x6a8] sm:$0xff]  ;;  %v511_v5 = vld [vmem:[#allocation6 + $0x6a0] sm:$0xff] }
  0x8e   :  { %v265_v18 = vcombine.low %v257_v51, %v264_v0  ;;  %v1153_v51 = vpack.c.bf16 %v393_v55, %v391_v43  ;;  %v1155_v0 = vpack.c.bf16 %v398_v48, %v396_v16  ;;  %v408_v3 = vld [vmem:[#allocation6 + $0x368] sm:$0xff]  ;;  %v407_v2 = vld [vmem:[#allocation6 + $0x360] sm:$0xff]  ;;  %v409_v41 = vld [vmem:[#allocation6 + $0x370] sm:$0xff] }
  0x8f   :  { %v1167_v9 = vpack.c.bf16 %v410_v4, %v408_v3  ;;  %v412_v35 = vld [vmem:[#allocation6 + $0x388] sm:$0xff]  ;;  %v522_v49 = vld [vmem:[#allocation6 + $0x6f8] sm:$0xff]  ;;  %v411_v43 = vld [vmem:[#allocation6 + $0x380] sm:$0xff] }
  0x90   :  { %1134 = vmatpush1.bf16.msra.mxu1 %v1133_v60  ;;  %v281_v13 = vrot.slane %v265_v18, 7  ;;  %v506_v60 = vld [vmem:[#allocation6 + $0x678] sm:$0xff]  ;;  %v503_v18 = vld [vmem:[#allocation6 + $0x660] sm:$0xff]  ;;  %v520_v53 = vld [vmem:[#allocation6 + $0x6e8] sm:$0xff] }
  0x91   :  { %1136 = vmatprep.subr.bf16.mxu1 %v1135_v1  ;;  %v395_v1 = vld [vmem:[#allocation6 + $0x300] sm:$0xff]  ;;  %v413_v55 = vld [vmem:[#allocation6 + $0x390] sm:$0xff]  ;;  %v418_v16 = vld [vmem:[#allocation6 + $0x3b8] sm:$0xff] }
  0x92   :  { %v282_v23 = vsel %vm271_vm0, %v281_v13, %v231_v17  ;;  %v1263_v17 = vpack.c.bf16 %v506_v60, %v504_v50  ;;  %v521_v44 = vld [vmem:[#allocation6 + $0x6f0] sm:$0xff]  ;;  %v524_v45 = vld [vmem:[#allocation6 + $0x708] sm:$0xff]  ;;  %v1173_v50 = vpack.c.bf16 %v413_v55, %v411_v43  ;;  %v422_v56 = vld [vmem:[#allocation6 + $0x3d8] sm:$0xff] }
  0x93   :  { %v283_v26 = vsel %vm273_vm1, %v281_v13, %v282_v23  ;;  %v406_v23 = vld [vmem:[#allocation6 + $0x358] sm:$0xff]  ;;  %v421_v19 = vld [vmem:[#allocation6 + $0x3d0] sm:$0xff]  ;;  %v424_v22 = vld [vmem:[#allocation6 + $0x3e8] sm:$0xff] }
  0x94   :  { %1138 = vmatpush1.bf16.msra.mxu1 %v1137_v21  ;;  %v284_v32 = vsel %vm275_vm2, %v281_v13, %v283_v26  ;;  %v505_v21 = vld [vmem:[#allocation6 + $0x670] sm:$0xff]  ;;  %v1163_v40 = vpack.c.bf16 %v406_v23, %v404_v20  ;;  %v426_v20 = vld [vmem:[#allocation6 + $0x3f8] sm:$0xff]  ;;  %v914_v3 = vld [vmem:[#allocation8 + $0x88] sm:$0xff] }
  0x95   :  { %1140 = vmatprep.subr.bf16.mxu1 %v1139_v57  ;;  %v285_v6 = vsel %vm277_vm3, %v281_v13, %v284_v32  ;;  %v508_v13 = vld [vmem:[#allocation6 + $0x688] sm:$0xff]  ;;  %v1157_v57 = vpack.c.bf16 %v397_v52, %v395_v1  ;;  %v1265_v26 = vpack.c.bf16 %v505_v21, %v503_v18  ;;  %v507_v32 = vld [vmem:[#allocation6 + $0x680] sm:$0xff]  ;;  %v417_v1 = vld [vmem:[#allocation6 + $0x3b0] sm:$0xff] }
  0x96   :  { %v298_v25 = vmul.f32 0.125, %v285_v6  ;;  %v514_v6 = vld [vmem:[#allocation6 + $0x6b8] sm:$0xff]  ;;  %v420_v52 = vld [vmem:[#allocation6 + $0x3c8] sm:$0xff]  ;;  %v525_v18 = vld [vmem:[#allocation6 + $0x710] sm:$0xff] }
  0x97   :  { %v528_v21 = vld [vmem:[#allocation6 + $0x728] sm:$0xff]  ;;  %v900_v43 = vld [vmem:[#allocation8 + $0x18] sm:$0xff]  ;;  %v917_v55 = vld [vmem:[#allocation8 + $0xa0] sm:$0xff] }
  0x98   :  { %1142 = vmatpush1.bf16.msra.mxu1 %v1141_v27  ;;  %v586_v12 = vcombine.high %v298_v25, %v298_v25  ;;  %v593_v30 = vrot.slane %v298_v25, %v1641_v38  ;;  %v1267_v27 = vpack.c.bf16 %v510_v58, %v508_v13  ;;  %v405_v25 = vld [vmem:[#allocation6 + $0x350] sm:$0xff]  ;;  %v1179_v58 = vpack.c.bf16 %v422_v56, %v420_v52  ;;  %v920_v52 = vld [vmem:[#allocation8 + $0xb8] sm:$0xff] }
  0x99   :  { %1144 = vmatprep.subr.bf16.mxu1 %v1143_v34  ;;  %v509_v34 = vld [vmem:[#allocation6 + $0x690] sm:$0xff]  ;;  %v1165_v31 = vpack.c.bf16 %v405_v25, %v403_v24  ;;  %v913_v25 = vld [vmem:[#allocation8 + $0x80] sm:$0xff] }
  0x9a   :  { %v601_v36 = vcombine.high %v593_v30, %v593_v30  ;;  %v1773_v46 = vrot.slane %v586_v12, %v1641_v38  ;;  %v1257_v38 = vpack.c.bf16 %v497_v47, %v495_v62  ;;  %v1269_v28 = vpack.c.bf16 %v509_v34, %v507_v32  ;;  %v513_v12 = vld [vmem:[#allocation6 + $0x6b0] sm:$0xff]  ;;  %v515_v62 = vld [vmem:[#allocation6 + $0x6c0] sm:$0xff]  ;;  %v532_v34 = vld [vmem:[#allocation6 + $0x748] sm:$0xff] }
  0x9b   :  { %v517_v47 = vld [vmem:[#allocation6 + $0x6d0] sm:$0xff] }
  0x9c   :  { %1146 = vmatpush1.bf16.msra.mxu1 %v1145_v29  ;;  %817 = vmatprep.mubr.f32.mxu0 %v601_v36  ;;  %v602_v15 = vcombine.high %v1773_v46, %v1773_v46  ;;  %v1271_v29 = vpack.c.bf16 %v514_v6, %v512_v39  ;;  %v414_v36 = vld [vmem:[#allocation6 + $0x398] sm:$0xff]  ;;  %v1277_v48 = vpack.c.bf16 %v517_v47, %v515_v62  ;;  %v529_v32 = vld [vmem:[#allocation6 + $0x730] sm:$0xff]  ;;  %v540_v47 = vld [vmem:[#allocation6 + $0x788] sm:$0xff] }
  0x9d   :  { %1148 = vmatprep.subr.bf16.mxu1 %v1147_v8  ;;  %818 = vmatmul.mubr.f32.vlgmr.msra.gmra.mrb[0].mxu0 %v593_v30  ;;  %v516_v30 = vld [vmem:[#allocation6 + $0x6c8] sm:$0xff]  ;;  %v518_v8 = vld [vmem:[#allocation6 + $0x6d8] sm:$0xff]  ;;  %v1183_v6 = vpack.c.bf16 %v426_v20, %v424_v22  ;;  %v425_v24 = vld [vmem:[#allocation6 + $0x3f0] sm:$0xff] }
  0x9e   :  { %1254 = vmatpush1.bf16.msra.mxu0 %v1253_v42  ;;  %888 = vmatprep.mubr.f32.mxu0 %v602_v15  ;;  %v1273_v42 = vpack.c.bf16 %v513_v12, %v511_v5  ;;  %v416_v15 = vld [vmem:[#allocation6 + $0x3a8] sm:$0xff]  ;;  %v533_v5 = vld [vmem:[#allocation6 + $0x750] sm:$0xff]  ;;  %v547_v22 = vld [vmem:[#allocation6 + $0x7c0] sm:$0xff] }
  0x9f   :  { %1256 = vmatprep.subr.bf16.mxu0 %v1255_v61  ;;  %v1275_v61 = vpack.c.bf16 %v518_v8, %v516_v30  ;;  %v1175_v60 = vpack.c.bf16 %v418_v16, %v416_v15  ;;  %v536_v12 = vld [vmem:[#allocation6 + $0x768] sm:$0xff]  ;;  %v1315_v8 = vpack.c.bf16 %v914_v3, %v913_v25  ;;  %v537_v62 = vld [vmem:[#allocation6 + $0x770] sm:$0xff]  ;;  %v905_v3 = vld [vmem:[#allocation8 + $0x40] sm:$0xff] }
  0xa0   :  { %1150 = vmatpush1.bf16.msra.mxu1 %v1149_v54  ;;  %v1169_v54 = vpack.c.bf16 %v409_v41, %v407_v2  ;;  %v898_v2 = vld [vmem:[#allocation8 + $0x8] sm:$0xff]  ;;  %v915_v41 = vld [vmem:[#allocation8 + $0x90] sm:$0xff] }
  0xa1   :  { %1152 = vmatprep.subr.bf16.mxu1 %v1151_v37  ;;  %v1171_v37 = vpack.c.bf16 %v414_v36, %v412_v35  ;;  %v916_v35 = vld [vmem:[#allocation8 + $0x98] sm:$0xff]  ;;  %v918_v15 = vld [vmem:[#allocation8 + $0xa8] sm:$0xff]  ;;  %v549_v20 = vld [vmem:[#allocation6 + $0x7d0] sm:$0xff] }
  0xa2   :  { %1258 = vmatpush1.bf16.msra.mxu0 %v1257_v38  ;;  %v1279_v38 = vpack.c.bf16 %v522_v49, %v520_v53  ;;  %v1319_v49 = vpack.c.bf16 %v916_v35, %v915_v41  ;;  %v909_v41 = vld [vmem:[#allocation8 + $0x60] sm:$0xff]  ;;  %v910_v35 = vld [vmem:[#allocation8 + $0x68] sm:$0xff] }
  0xa3   :  { %1260 = vmatprep.subr.bf16.mxu0 %v1259_v59  ;;  %v519_v59 = vld [vmem:[#allocation6 + $0x6e0] sm:$0xff] }
  0xa4   :  { %1154 = vmatpush1.bf16.msra.mxu1 %v1153_v51  ;;  %v526_v51 = vld [vmem:[#allocation6 + $0x718] sm:$0xff]  ;;  %v1281_v7 = vpack.c.bf16 %v521_v44, %v519_v59  ;;  %v541_v59 = vld [vmem:[#allocation6 + $0x790] sm:$0xff]  ;;  %v544_v44 = vld [vmem:[#allocation6 + $0x7a8] sm:$0xff] }
  0xa5   :  { %1156 = vmatprep.subr.bf16.mxu1 %v1155_v0  ;;  %v415_v0 = vld [vmem:[#allocation6 + $0x3a0] sm:$0xff] }
  0xa6   :  { %1262 = vmatpush1.bf16.msra.mxu0 %v1261_v11  ;;  %v1283_v11 = vpack.c.bf16 %v526_v51, %v524_v45  ;;  %v1177_v13 = vpack.c.bf16 %v417_v1, %v415_v0  ;;  %v1323_v51 = vpack.c.bf16 %v918_v15, %v917_v55  ;;  %v902_v0 = vld [vmem:[#allocation8 + $0x28] sm:$0xff]  ;;  %v919_v1 = vld [vmem:[#allocation8 + $0xb0] sm:$0xff]  ;;  %v555_v55 = vld [vmem:[%s1801_s2] sm:$0x3]  ;;  %v563_v15 = vsub.s32 1, %v1584_v10  ;;  %s1474_s2 = smov [#allocation9]  }
  0xa7   :  { %1264 = vmatprep.subr.bf16.mxu0 %v1263_v17  ;;  %v523_v17 = vld [vmem:[#allocation6 + $0x700] sm:$0xff]  ;;  %s1013_s11 = sshll.u32 %s1474_s2, 4  ;;  %s1014_s11 = int_to_ptr.vmem [resolvable:$true] %s1013_s11 }
  0xa8   :  { %1158 = vmatpush1.bf16.msra.mxu1 %v1157_v57  ;;  %v530_v57 = vld [vmem:[#allocation6 + $0x738] sm:$0xff]  ;;  %v1285_v23 = vpack.c.bf16 %v525_v18, %v523_v17  ;;  %v548_v17 = vld [vmem:[#allocation6 + $0x7c8] sm:$0xff]  ;;  %s1436_s12 = scalar_lea.vmem %s1014_s11, 32  ;;  %p1441_p11 = scmp.lt.s32.totalorder %s1014_s11, %s1014_s11 }
  0xa9   :  { %1160 = vmatprep.subr.bf16.mxu1 %v1159_v14  ;;  %v419_v14 = vld [vmem:[#allocation6 + $0x3c0] sm:$0xff]  ;;  %p1437_p10 = scmp.ne.s32.totalorder %s1014_s11, %s1436_s12  ;;  %p1442_p12 = scmp.lt.s32.totalorder %s1436_s12, %s1436_s12 }
  0xaa   :  { %1266 = vmatpush1.bf16.msra.mxu0 %v1265_v26  ;;  %v1287_v26 = vpack.c.bf16 %v530_v57, %v528_v21  ;;  %v1181_v39 = vpack.c.bf16 %v421_v19, %v419_v14  ;;  %v550_v21 = vld [vmem:[#allocation6 + $0x7d8] sm:$0xff]  ;;  %v903_v57 = vld [vmem:[#allocation8 + $0x30] sm:$0xff] }
  0xab   :  { %1268 = vmatprep.subr.bf16.mxu0 %v1267_v27  ;;  %v527_v27 = vld [vmem:[#allocation6 + $0x720] sm:$0xff]  ;;  %v1307_v19 = vpack.c.bf16 %v550_v21, %v548_v17  ;;  %p1443_p13 = por %p1442_p12, %p1441_p11 }
  0xac   :  { %1162 = vmatpush1.bf16.msra.mxu1 %v1161_v63  ;;  %v534_v63 = vld [vmem:[#allocation6 + $0x758] sm:$0xff]  ;;  %v1289_v4 = vpack.c.bf16 %v529_v32, %v527_v27  ;;  %v1309_v32 = vpack.c.bf16 %v549_v20, %v547_v22 }
  0xad   :  { %1164 = vmatprep.subr.bf16.mxu1 %v1163_v40  ;;  %v423_v40 = vld [vmem:[#allocation6 + $0x3e0] sm:$0xff]  ;;  %v554_v27 = vld [vmem:[#allocation6 + $0x7f8] sm:$0xff]  ;;  %p1444_p0 = pnand %p1443_p13, %p1437_p10 }
  0xae   :  { %1270 = vmatpush1.bf16.msra.mxu0 %v1269_v28  ;;  %v1291_v28 = vpack.c.bf16 %v534_v63, %v532_v34  ;;  %v1185_v30 = vpack.c.bf16 %v425_v24, %v423_v40  ;;  %v553_v63 = vld [vmem:[#allocation6 + $0x7f0] sm:$0xff]  ;;  %v921_v40 = vld [vmem:[#allocation8 + $0xc0] sm:$0xff]  ;;  %v922_v24 = vld [vmem:[#allocation8 + $0xc8] sm:$0xff] }
  0xaf   :  { %1272 = vmatprep.subr.bf16.mxu0 %v1271_v29  ;;  %v531_v29 = vld [vmem:[#allocation6 + $0x740] sm:$0xff]  ;;  %v1331_v25 = vpack.c.bf16 %v922_v24, %v921_v40 }
  0xb0   :  { %1166 = vmatpush1.bf16.msra.mxu1 %v1165_v31  ;;  %v538_v31 = vld [vmem:[#allocation6 + $0x778] sm:$0xff]  ;;  %v1293_v36 = vpack.c.bf16 %v533_v5, %v531_v29  ;;  %v923_v29 = vld [vmem:[#allocation8 + $0xd0] sm:$0xff] }
  0xb1   :  { %1168 = vmatprep.subr.bf16.mxu1 %v1167_v9  ;;  %v897_v9 = vld [vmem:[#allocation8] sm:$0xff]  ;;  %v924_v5 = vld [vmem:[#allocation8 + $0xd8] sm:$0xff] }
  0xb2   :  { %1274 = vmatpush1.bf16.msra.mxu0 %v1273_v42  ;;  %v1295_v42 = vpack.c.bf16 %v538_v31, %v536_v12  ;;  %v1317_v53 = vpack.c.bf16 %v898_v2, %v897_v9  ;;  %v1335_v12 = vpack.c.bf16 %v924_v5, %v923_v29  ;;  %v908_v31 = vld [vmem:[#allocation8 + $0x58] sm:$0xff]  ;;  %v926_v2 = vld [vmem:[#allocation8 + $0xe8] sm:$0xff] }
  0xb3   :  { %1276 = vmatprep.subr.bf16.mxu0 %v1275_v61  ;;  %v535_v61 = vld [vmem:[#allocation6 + $0x760] sm:$0xff] }
  0xb4   :  { %1170 = vmatpush1.bf16.msra.mxu1 %v1169_v54  ;;  %v542_v54 = vld [vmem:[#allocation6 + $0x798] sm:$0xff]  ;;  %v1297_v16 = vpack.c.bf16 %v537_v62, %v535_v61  ;;  %v1341_v61 = vpack.c.bf16 %v910_v35, %v909_v41 }
  0xb5   :  { %1172 = vmatprep.subr.bf16.mxu1 %v1171_v37  ;;  %v899_v37 = vld [vmem:[#allocation8 + $0x10] sm:$0xff] }
  0xb6   :  { %1278 = vmatpush1.bf16.msra.mxu0 %v1277_v48  ;;  %v1299_v48 = vpack.c.bf16 %v542_v54, %v540_v47  ;;  %v1321_v45 = vpack.c.bf16 %v900_v43, %v899_v37  ;;  %v911_v47 = vld [vmem:[#allocation8 + $0x70] sm:$0xff]  ;;  %v559_v43 = vsub.s32 0, %v1584_v10 }
  0xb7   :  { %1280 = vmatprep.subr.bf16.mxu0 %v1279_v38  ;;  %v539_v38 = vld [vmem:[#allocation6 + $0x780] sm:$0xff] }
  0xb8   :  { %1174 = vmatpush1.bf16.msra.mxu1 %v1173_v50  ;;  %v546_v50 = vld [vmem:[#allocation6 + $0x7b8] sm:$0xff]  ;;  %v1301_v56 = vpack.c.bf16 %v541_v59, %v539_v38 }
  0xb9   :  { %1176 = vmatprep.subr.bf16.mxu1 %v1175_v60  ;;  %v901_v60 = vld [vmem:[#allocation8 + $0x20] sm:$0xff] }
  0xba   :  { %1282 = vmatpush1.bf16.msra.mxu0 %v1281_v7  ;;  %v1303_v7 = vpack.c.bf16 %v546_v50, %v544_v44  ;;  %v1325_v18 = vpack.c.bf16 %v902_v0, %v901_v60 }
  0xbb   :  { %1284 = vmatprep.subr.bf16.mxu0 %v1283_v11  ;;  %v543_v11 = vld [vmem:[#allocation6 + $0x7a0] sm:$0xff] }
  0xbc   :  { %1178 = vmatpush1.bf16.msra.mxu1 %v1177_v13  ;;  %v1327_v13 = vpack.c.bf16 %v920_v52, %v919_v1  ;;  %v1023_v52 = vld [vmem:[%s1803_s4] ss:$0 sm:$0xff] }
  0xbd   :  { %1180 = vmatprep.subr.bf16.mxu1 %v1179_v58  ;;  %v904_v58 = vld [vmem:[#allocation8 + $0x38] sm:$0xff] }
  0xbe   :  { %1286 = vmatpush1.bf16.msra.mxu0 %v1285_v23  ;;  %v1329_v23 = vpack.c.bf16 %v904_v58, %v903_v57 }
  0xbf   :  { %1288 = vmatprep.subr.bf16.mxu0 %v1287_v26  ;;  %v552_v26 = vld [vmem:[#allocation6 + $0x7e8] sm:$0xff] }
  0xc0   :  { %1182 = vmatpush1.bf16.msra.mxu1 %v1181_v39  ;;  %v1311_v34 = vpack.c.bf16 %v554_v27, %v552_v26  ;;  %v551_v39 = vld [vmem:[#allocation6 + $0x7e0] sm:$0xff] }
  0xc1   :  { %1184 = vmatprep.subr.bf16.mxu1 %v1183_v6  ;;  %v1313_v6 = vpack.c.bf16 %v553_v63, %v551_v39 }
  0xc2   :  { %1290 = vmatpush1.bf16.msra.mxu0 %v1289_v4  ;;  %v906_v4 = vld [vmem:[#allocation8 + $0x48] sm:$0xff] }
  0xc3   :  { %1292 = vmatprep.subr.bf16.mxu0 %v1291_v28  ;;  %v1333_v28 = vpack.c.bf16 %v906_v4, %v905_v3 }
  0xc4   :  { %1186 = vmatpush1.bf16.msra.mxu1 %v1185_v30  ;;  %v907_v30 = vld [vmem:[#allocation8 + $0x50] sm:$0xff] }
  0xc5   :  { %1316 = vmatprep.subr.bf16.mxu1 %v1315_v8  ;;  %v925_v8 = vld [vmem:[#allocation8 + $0xe0] sm:$0xff]  ;;  %v1337_v9 = vpack.c.bf16 %v908_v31, %v907_v30 }
  0xc6   :  { %1294 = vmatpush1.bf16.msra.mxu0 %v1293_v36  ;;  %v927_v36 = vld [vmem:[#allocation8 + $0xf0] sm:$0xff] }
  0xc7   :  { %747 = vmatmul.mubr.f32.vlgmr.msra.gmra.mrb[0].mxu1 %v1767_v33  ;;  %1296 = vmatprep.subr.bf16.mxu0 %v1295_v42  ;;  %v545_v33 = vld [vmem:[#allocation6 + $0x7b0] sm:$0xff]  ;;  %v928_v42 = vld [vmem:[#allocation8 + $0xf8] sm:$0xff] }
  0xc8   :  { %1318 = vmatpush3.bf16.msra.mxu1 %v1317_v53  ;;  %v1305_v14 = vpack.c.bf16 %v545_v33, %v543_v11  ;;  %v1343_v62 = vpack.c.bf16 %v928_v42, %v927_v36  ;;  %v912_v53 = vld [vmem:[#allocation8 + $0x78] sm:$0xff] }
  0xc9   :  { %1320 = vmatprep.subr.bf16.mxu1 %v1319_v49  ;;  %v1345_v54 = vpack.c.bf16 %v912_v53, %v911_v47 }
  0xca   :  { %1298 = vmatpush1.bf16.msra.mxu0 %v1297_v16  ;;  %v560_v16 = vrot.slane %v555_v55, %v559_v43 }
  0xcb   :  { %1300 = vmatprep.subr.bf16.mxu0 %v1299_v48  ;;  %v564_v48 = vrot.slane %v555_v55, %v563_v15 }
  0xcc   :  { %1322 = vmatpush3.bf16.msra.mxu1 %v1321_v45 }
  0xcd   :  { %1324 = vmatprep.subr.bf16.mxu1 %v1323_v51 }
  0xce   :  { %1302 = vmatpush1.bf16.msra.mxu0 %v1301_v56 }
  0xcf   :  { %1304 = vmatprep.subr.bf16.mxu0 %v1303_v7 }
  0xd0   :  { %1326 = vmatpush3.bf16.msra.mxu1 %v1325_v18 }
  0xd1   :  { %1328 = vmatprep.subr.bf16.mxu1 %v1327_v13 }
  0xd2   :  { %1306 = vmatpush1.bf16.msra.mxu0 %v1305_v14 }
  0xd3   :  { %1308 = vmatprep.subr.bf16.mxu0 %v1307_v19 }
  0xd4   :  { %1330 = vmatpush3.bf16.msra.mxu1 %v1329_v23 }
  0xd5   :  { %1332 = vmatprep.subr.bf16.mxu1 %v1331_v25 }
  0xd6   :  { %1310 = vmatpush1.bf16.msra.mxu0 %v1309_v32 }
  0xd7   :  { %1312 = vmatprep.subr.bf16.mxu0 %v1311_v34 }
  0xd8   :  { %1334 = vmatpush3.bf16.msra.mxu1 %v1333_v28 }
  0xd9   :  { %1336 = vmatprep.subr.bf16.mxu1 %v1335_v12 }
  0xda   :  { %1314 = vmatpush1.bf16.msra.mxu0 %v1313_v6 }
  0xdc   :  { %1338 = vmatpush3.bf16.msra.mxu1 %v1337_v9 }
  0xdd   :  { %889 = vmatmul.mubr.f32.vlgmr.msra.gmra.mrb[0].mxu0 %v1773_v46  ;;  %v1339_v46 = vpack.c.bf16 %v926_v2, %v925_v8 }
  0xdf   :  { %1340 = vmatprep.subr.bf16.mxu1 %v1339_v46 }
  0xe0   :  { %1342 = vmatpush3.bf16.msra.mxu1 %v1341_v61 }
  0xe1   :  { %1344 = vmatprep.subr.bf16.mxu1 %v1343_v62 }
  0xe4   :  { %1346 = vmatpush3.bf16.msra.mxu1 %v1345_v54 }
 0x19a   :  { %v748_v49 = vpop.f32.mrb[0].mxu1 }
 0x19b   :  { %v750_v37 = vpop.f32.mrb[1].mxu1  ;;  %v1347_v38 = vadd.f32 %v748_v49, %v560_v16 }
 0x19c   :  { %v1349_v59 = vadd.f32 %v750_v37, %v564_v48 }
 0x1b0   :  { %v890_v44 = vpop.f32.mrb[0].mxu0 }
 0x1b1   :  { %v1348_v45 = vadd.f32 %v1347_v38, %v890_v44  ;;  %v892_v50 = vpop.f32.mrb[1].mxu0 }
 0x1b2   :  { %v1350_v51 = vadd.f32 %v1349_v59, %v892_v50 }
 0x1b4   :  { %1366 = vtanh.f32 %v1350_v51 }
 0x1b5   :  { %1368 = vtanh.f32 %v1348_v45 }
 0x1be   :  { %v1367_v60 = vpop.eup %1366 }
 0x1bf   :  { %v1369_v0 = vpop.eup %1368  ;;  %1000 = vmatprep.mubr.f32.mxu1 %v1367_v60 }
 0x1c0   :  { %1001 = vmatmul.mubr.f32.vlgmr.msra.gmra.mrb[2].mxu1 %v1369_v0 }
 0x293   :  { %v1056_v1 = vpop.f32.mrb[2].mxu1 }
 0x294   :  { %v1057_v10 = vpop.f32.mrb[3].mxu1 }
 0x295   :  { %v1058_v56 = vadd.f32 %v1057_v10, %v1056_v1 }
 0x297   :  { %v1003_v7 = vadd.f32 %v1058_v56, %v1023_v52 }
 0x299   :  { %1006 = vst [vmem:[#allocation9] sm:$0x3] %v1003_v7 }
 0x29a   :  { %1447 = shalt.err (!%p1444_p0)
}
 0x29b   :  { %s1448_s15 = scalar_lea.hbm %s1804_s5, 32 }
 0x29c   :  { %p1449_p1 = scmp.ne.s32.totalorder %s1804_s5, %s1448_s15  ;;  %p1452_p2 = scmp.lt.u32.totalorder %s1448_s15, %s1804_s5 }
 0x29e   :  { %p1454_p3 = pnand %p1452_p2, %p1449_p1 }
 0x2a0   :  { %1457 = shalt.err (!%p1454_p3)
}
 0x2a1   :  { %1016 = dma.vmem_to_hbm [thread:$0]  %s1014_s11, 32, %s1804_s5, [#allocation5]  }
 0x2a2   :  { %1462 = dma.done.wait [#allocation5], 32  }
 0x2a3   :  { %1463 = vsyncadd [#allocation5], 4294967264 }
 0x2a4   :  { %1020 = vsyncpa [#allocation4], 1 }
 0x2a5   :  { %1021 = vsyncpa [#allocation7], 1 }
 0x2a6   :  { %1022 = vsyncpa [#allocation5], 1 }

</bundles_post_ra>
